<compile_context>
chip_gen: v5e
topology: v5e:2x2
jax: 0.10.0
libtpu: 0.0.40
codegen_flags: <defaults>
</compile_context>

<pallas_src>
import functools

import jax
import jax.numpy as jnp
from jax.experimental import pallas as pl
from jax.experimental.pallas import tpu as pltpu

EPS = 1e-5
LANE = 128


def _round_up(v, m):
    return (v + m - 1) // m * m


# ---------------------------------------------------------------------------
# Pass 1: fused depthwise 3x3 + pointwise 1x1, plus per-tile BN partial sums.
# ---------------------------------------------------------------------------
def _dwpw_stats_kernel(xm_ref, xh0_ref, xh1_ref, dww_ref, pww_ref,
                       z_ref, stats_ref):
    """Per (batch, row-tile) block.

    xm_ref   : (tile_h, Wpad, Cp)   zero-padded NHWC rows of this tile
    xh0_ref  : (1, Wpad, Cp)        halo row just below the tile
    xh1_ref  : (1, Wpad, Cp)        second halo row below the tile
    dww_ref  : (9, Cp)              depthwise taps, row k = kh*3 + kw   (f32)
    pww_ref  : (Cp, Coutp)          pointwise weight (MXU dtype)
    z_ref    : (tile_h*W, Coutp)    un-normalized output slab (lane-dense)
    stats_ref: (2, Coutp)           row 0 = sum(z), row 1 = sum(z*z)    (f32)
    """
    tile_h, wpad, cp = xm_ref.shape
    rw, _ = z_ref.shape
    w = rw // tile_h

    # tile_h + 2 consecutive padded rows.  The halo DMAs are only 2 rows, so
    # the input is read from HBM ~once (no duplicated overlapping-tile stack).
    x = jnp.concatenate([xm_ref[...], xh0_ref[...], xh1_ref[...]],
                        axis=0).astype(jnp.float32)
    dw = dww_ref[...]

    # kw = 0/1/2 shifts along the W (sublane) axis via XLU rolls; after the
    # roll the needed window is always the aligned prefix [:, :w, :].
    shifted = (x,
               pltpu.roll(x, wpad - 1, 1),
               pltpu.roll(x, wpad - 2, 1))

    # depthwise 3x3: 9 statically-unrolled VPU multiply-accumulates
    acc = jnp.zeros((tile_h, w, cp), jnp.float32)
    for kh in range(3):
        for kw in range(3):
            acc = acc + shifted[kw][kh:kh + tile_h, :w, :] * dw[kh * 3 + kw, :]

    # pointwise 1x1 conv == channel matmul on the MXU (bf16 operands on v6e/v7x)
    z = jnp.dot(acc.reshape(rw, cp).astype(pww_ref.dtype), pww_ref[...],
                preferred_element_type=jnp.float32)

    # per-tile BN partial statistics, accumulated in f32
    stats_ref[...] = jnp.concatenate(
        [jnp.sum(z, axis=0, keepdims=True),
         jnp.sum(z * z, axis=0, keepdims=True)], axis=0)

    z_ref[...] = z.astype(z_ref.dtype)


# ---------------------------------------------------------------------------
# Pass 2: tiled elementwise BatchNorm apply (z * scale + shift).
# ---------------------------------------------------------------------------
def _bn_apply_kernel(z_ref, scale_ref, shift_ref, out_ref):
    out_ref[...] = (z_ref[...].astype(jnp.float32) * scale_ref[0, :]
                    + shift_ref[0, :]).astype(out_ref.dtype)


def _pick_tile_h(H, W, Wpad, Cp, Coutp, x_itemsize, z_itemsize,
                 budget_bytes=10 * 1024 * 1024):
    """Largest row tile that divides H and keeps the per-step VMEM footprint
    (double-buffered DMAs + f32 temporaries) under a budget sized so the same
    code fits v7x's 64 MiB physical / 32 MiB scoped VMEM."""
    for th in (64, 32, 16, 8, 4, 2, 1):
        if H % th:
            continue
        in_main = th * Wpad * Cp * x_itemsize
        halo = 2 * Wpad * Cp * x_itemsize
        x_f32 = (th + 2) * Wpad * Cp * 4      # concatenated f32 tile
        rolled = 2 * x_f32                    # kw = 1, 2 shifted copies
        acc = th * W * Cp * 4
        z_f32 = th * W * Coutp * 4
        z_out = th * W * Coutp * z_itemsize
        footprint = 2 * (in_main + halo)      # double-buffered input DMA
        footprint += x_f32 + rolled + acc + z_f32 + 2 * z_out
        if footprint <= budget_bytes:
            return th
    return 1


@functools.partial(jax.jit, static_argnames=("mxu_dtype", "tile_h"))
def separable_conv2d(x_nchw, dw_w, dw_b, pw_w, pw_b, gamma, beta,
                     *, mxu_dtype=jnp.bfloat16, tile_h=None):
    """Forward of SeparableConv2d (depthwise 3x3 + pointwise 1x1 + BN, train mode).

    x_nchw: (N, C, H, W); dw_w: (C,1,3,3); pw_w: (Cout,C,1,1) (PyTorch layouts).
    dw_b / pw_b are accepted for interface parity but cancel exactly under the
    batch-mean subtraction of training-mode BatchNorm, so they are never added.
    Returns (N, Cout, H, W) float32.
    """
    del dw_b, pw_b                      # exact cancellation under train-mode BN
    N, C, H, W = x_nchw.shape
    Cout = pw_w.shape[0]
    Cp = _round_up(C, LANE)
    Coutp = _round_up(Cout, LANE)
    Wpad = _round_up(W + 2, 8)
    z_dtype = jnp.dtype(mxu_dtype)
    x_dtype = z_dtype                   # bf16 input storage on the fast path

    if tile_h is None:
        tile_h = _pick_tile_h(H, W, Wpad, Cp, Coutp,
                              jnp.dtype(x_dtype).itemsize, z_dtype.itemsize)
    assert H % tile_h == 0, "tile_h must divide H"
    # TODO(synk): support a masked partial last row-tile so odd H does not have
    # to fall back to tile_h == 1.
    Gh = H // tile_h
    RW = tile_h * W

    # ---- layout plumbing (one XLA pass: transpose + zero pad + cast) --------
    x_nhwc = jnp.transpose(x_nchw, (0, 2, 3, 1))
    xp = jnp.pad(x_nhwc, ((0, 0), (1, 1), (1, Wpad - W - 1),
                          (0, Cp - C))).astype(x_dtype)     # (N, H+2, Wpad, Cp)

    dww = jnp.transpose(dw_w[:, 0, :, :], (1, 2, 0)).reshape(9, C)
    dww = jnp.pad(dww, ((0, 0), (0, Cp - C))).astype(jnp.float32)

    pww = jnp.transpose(pw_w[:, :, 0, 0], (1, 0))                    # (C, Cout)
    pww = jnp.pad(pww, ((0, Cp - C), (0, Coutp - Cout))).astype(mxu_dtype)

    # ---- pass 1: depthwise + pointwise + partial BN sums --------------------
    flops1 = int(N * H * W * (2 * 9 * Cp + 2 * Cp * Coutp))
    bytes1 = int(xp.nbytes
                 + N * Gh * 2 * Wpad * Cp * jnp.dtype(x_dtype).itemsize
                 + dww.nbytes + pww.nbytes
                 + N * Gh * RW * Coutp * z_dtype.itemsize
                 + N * Gh * 2 * Coutp * 4)

    z, stats = pl.pallas_call(
        _dwpw_stats_kernel,
        out_shape=(jax.ShapeDtypeStruct((N, Gh, RW, Coutp), z_dtype),
                   jax.ShapeDtypeStruct((N, Gh, 2, Coutp), jnp.float32)),
        grid_spec=pltpu.PrefetchScalarGridSpec(
            num_scalar_prefetch=0,
            grid=(N, Gh),
            in_specs=[
                # non-overlapping tile_h-row main block of the padded input
                pl.BlockSpec((None, tile_h, Wpad, Cp),
                             lambda n, h: (n, h, 0, 0)),
                # the two halo rows just below the tile (1-row blocks, same
                # HBM array -> no duplicated input materialization)
                pl.BlockSpec((None, 1, Wpad, Cp),
                             lambda n, h: (n, (h + 1) * tile_h, 0, 0)),
                pl.BlockSpec((None, 1, Wpad, Cp),
                             lambda n, h: (n, (h + 1) * tile_h + 1, 0, 0)),
                pl.BlockSpec((9, Cp), lambda n, h: (0, 0)),
                pl.BlockSpec((Cp, Coutp), lambda n, h: (0, 0)),
            ],
            out_specs=[
                pl.BlockSpec((None, None, RW, Coutp), lambda n, h: (n, h, 0, 0)),
                pl.BlockSpec((None, None, 2, Coutp), lambda n, h: (n, h, 0, 0)),
            ]),
        compiler_params=pltpu.CompilerParams(
            dimension_semantics=("parallel", "parallel"),
            vmem_limit_bytes=32 * 1024 * 1024),
        cost_estimate=pl.CostEstimate(flops=flops1, transcendentals=0,
                                      bytes_accessed=bytes1),
    )(xp, xp, xp, dww, pww)

    # ---- finish the BN reduction (tiny, per-channel, plain XLA) -------------
    tot = jnp.sum(stats, axis=(0, 1))                    # (2, Coutp), f32
    cnt = float(N * H * W)
    mean = tot[0] / cnt
    # E[z^2] - E[z]^2 with f32 partial sums; clamp tiny negative round-off.
    # TODO(synk): for extremely large N*H*W switch to a Welford / two-pass
    # reduction to avoid cancellation.
    var = jnp.maximum(tot[1] / cnt - mean * mean, 0.0)
    gamma_p = jnp.pad(gamma.astype(jnp.float32), (0, Coutp - Cout))
    beta_p = jnp.pad(beta.astype(jnp.float32), (0, Coutp - Cout))
    scale = (gamma_p * jax.lax.rsqrt(var + EPS)).reshape(1, Coutp)
    shift = (beta_p - mean * scale[0]).reshape(1, Coutp)

    # ---- pass 2: tiled elementwise normalize --------------------------------
    flops2 = int(2 * N * H * W * Coutp)
    bytes2 = int(z.nbytes + N * Gh * RW * Coutp * 4 + 2 * Coutp * 4)

    out = pl.pallas_call(
        _bn_apply_kernel,
        out_shape=jax.ShapeDtypeStruct((N, Gh, RW, Coutp), jnp.float32),
        grid_spec=pltpu.PrefetchScalarGridSpec(
            num_scalar_prefetch=0,
            grid=(N, Gh),
            in_specs=[
                pl.BlockSpec((None, None, RW, Coutp), lambda n, h: (n, h, 0, 0)),
                pl.BlockSpec((1, Coutp), lambda n, h: (0, 0)),
                pl.BlockSpec((1, Coutp), lambda n, h: (0, 0)),
            ],
            out_specs=pl.BlockSpec((None, None, RW, Coutp),
                                   lambda n, h: (n, h, 0, 0))),
        compiler_params=pltpu.CompilerParams(
            dimension_semantics=("parallel", "parallel"),
            vmem_limit_bytes=32 * 1024 * 1024),
        cost_estimate=pl.CostEstimate(flops=flops2, transcendentals=0,
                                      bytes_accessed=bytes2),
    )(z, scale, shift)

    # back to NCHW, drop the channel padding (contiguous reshape + one XLA
    # transpose pass).
    out = out.reshape(N, H, W, Coutp)[..., :Cout]
    return jnp.transpose(out, (0, 3, 1, 2))


def _reference(x, dw_w, dw_b, pw_w, pw_b, gamma, beta):
    """Pure-JAX reference matching the PyTorch forward (BN training mode)."""
    C = x.shape[1]
    y = jax.lax.conv_general_dilated(
        x, dw_w, window_strides=(1, 1), padding=((1, 1), (1, 1)),
        feature_group_count=C, dimension_numbers=("NCHW", "OIHW", "NCHW"))
    y = y + dw_b[None, :, None, None]
    z = jax.lax.conv_general_dilated(
        y, pw_w, window_strides=(1, 1), padding="VALID",
        dimension_numbers=("NCHW", "OIHW", "NCHW"))
    z = z + pw_b[None, :, None, None]
    mean = z.mean(axis=(0, 2, 3), keepdims=True)
    var = ((z - mean) ** 2).mean(axis=(0, 2, 3), keepdims=True)
    zn = (z - mean) / jnp.sqrt(var + EPS)
    return zn * gamma[None, :, None, None] + beta[None, :, None, None]


if __name__ == "__main__":
    N, C, H, W = 2, 4, 16, 16
    Cout = 8

    key = jax.random.PRNGKey(0)
    k_x, k_dw, k_db, k_pw, k_pb, k_g, k_b = jax.random.split(key, 7)

    x = jax.random.normal(k_x, (N, C, H, W), jnp.float32)
    # parameter shapes per nn.Conv2d / nn.BatchNorm2d in __init__
    dw_w = jax.random.normal(k_dw, (C, 1, 3, 3), jnp.float32) * 0.2
    dw_b = jax.random.normal(k_db, (C,), jnp.float32) * 0.1
    pw_w = jax.random.normal(k_pw, (Cout, C, 1, 1), jnp.float32) * 0.2
    pw_b = jax.random.normal(k_pb, (Cout,), jnp.float32) * 0.1
    gamma = 1.0 + 0.1 * jax.random.normal(k_g, (Cout,), jnp.float32)
    beta = 0.1 * jax.random.normal(k_b, (Cout,), jnp.float32)

    ref = _reference(x, dw_w, dw_b, pw_w, pw_b, gamma, beta)

    # 1) f32 MXU path, forced H-tiling (Gh=2) -> exercises the halo BlockSpecs
    #    and the cross-tile BN reduction; must match the f32 reference tightly.
    out_f32 = jax.block_until_ready(
        separable_conv2d(x, dw_w, dw_b, pw_w, pw_b, gamma, beta,
                         mxu_dtype=jnp.float32, tile_h=8))
    assert out_f32.shape == (N, Cout, H, W)
    assert jnp.allclose(out_f32, ref, rtol=1e-4, atol=1e-4), \
        f"f32 max abs err = {jnp.max(jnp.abs(out_f32 - ref))}"

    # 2) bf16 storage + bf16 MXU operands (v6e/v7x fast path), auto tile.
    #    Looser tolerance accounts for bf16 rounding of the inputs / matmul
    #    operands / intermediate relative to the f32 reference.
    out_bf16 = jax.block_until_ready(
        separable_conv2d(x, dw_w, dw_b, pw_w, pw_b, gamma, beta,
                         mxu_dtype=jnp.bfloat16))
    assert out_bf16.shape == (N, Cout, H, W)
    assert jnp.allclose(out_bf16, ref, rtol=1e-1, atol=1e-1), \
        f"bf16 max abs err = {jnp.max(jnp.abs(out_bf16 - ref))}"

    print("KERNEL_OK")
</pallas_src>

<mosaic_0001>
module attributes {stable_mosaic.version = 11 : i64} {
  func.func @_dwpw_stats_kernel(%arg0: i32, %arg1: i32, %arg2: memref<1x8x24x128xf32, #tpu.memory_space<vmem>>, %arg3: memref<1x1x24x128xf32, #tpu.memory_space<vmem>>, %arg4: memref<1x1x24x128xf32, #tpu.memory_space<vmem>>, %arg5: memref<9x128xf32, #tpu.memory_space<vmem>>, %arg6: memref<128x128xf32, #tpu.memory_space<vmem>>, %arg7: memref<1x1x128x128xf32, #tpu.memory_space<vmem>>, %arg8: memref<1x1x2x128xf32, #tpu.memory_space<vmem>>) attributes {dimension_semantics = [#tpu.dimension_semantics<parallel>, #tpu.dimension_semantics<parallel>], iteration_bounds = array<i64: 2, 2>, scalar_prefetch = 0 : i64, scratch_operands = 0 : i64, tpu.core_type = #tpu.core_type<tc>, window_params = [{transform_indices = @transform_0, window_bounds = array<i64: 1, 8, 24, 128>}, {transform_indices = @transform_1, window_bounds = array<i64: 1, 1, 24, 128>}, {transform_indices = @transform_2, window_bounds = array<i64: 1, 1, 24, 128>}, {pipeline_mode = #tpu.pipeline_mode<synchronous>, transform_indices = @transform_3, window_bounds = array<i64: 9, 128>}, {pipeline_mode = #tpu.pipeline_mode<synchronous>, transform_indices = @transform_4, window_bounds = array<i64: 128, 128>}, {transform_indices = @transform_5, window_bounds = array<i64: 1, 1, 128, 128>}, {transform_indices = @transform_6, window_bounds = array<i64: 1, 1, 2, 128>}]} {
    %c0 = arith.constant 0 : index
    %c0_0 = arith.constant 0 : index
    %c0_1 = arith.constant 0 : index
    %c0_2 = arith.constant 0 : index
    %0 = vector.load %arg2[%c0, %c0_0, %c0_1, %c0_2] : memref<1x8x24x128xf32, #tpu.memory_space<vmem>>, vector<1x8x24x128xf32>
    %1 = vector.shape_cast %0 : vector<1x8x24x128xf32> to vector<8x24x128xf32>
    %c0_3 = arith.constant 0 : index
    %c0_4 = arith.constant 0 : index
    %c0_5 = arith.constant 0 : index
    %c0_6 = arith.constant 0 : index
    %2 = vector.load %arg3[%c0_3, %c0_4, %c0_5, %c0_6] : memref<1x1x24x128xf32, #tpu.memory_space<vmem>>, vector<1x1x24x128xf32>
    %3 = vector.shape_cast %2 : vector<1x1x24x128xf32> to vector<1x24x128xf32>
    %c0_7 = arith.constant 0 : index
    %c0_8 = arith.constant 0 : index
    %c0_9 = arith.constant 0 : index
    %c0_10 = arith.constant 0 : index
    %4 = vector.load %arg4[%c0_7, %c0_8, %c0_9, %c0_10] : memref<1x1x24x128xf32, #tpu.memory_space<vmem>>, vector<1x1x24x128xf32>
    %5 = vector.shape_cast %4 : vector<1x1x24x128xf32> to vector<1x24x128xf32>
    %6 = tpu.concatenate %1, %3, %5 in 0 : vector<8x24x128xf32>, vector<1x24x128xf32>, vector<1x24x128xf32> -> vector<10x24x128xf32>
    %c0_11 = arith.constant 0 : index
    %c0_12 = arith.constant 0 : index
    %7 = vector.load %arg5[%c0_11, %c0_12] : memref<9x128xf32, #tpu.memory_space<vmem>>, vector<9x128xf32>
    %c23_i32 = arith.constant 23 : i32
    %8 = tpu.dynamic_rotate %6 by %c23_i32 dim 1 : vector<10x24x128xf32>, i32 -> vector<10x24x128xf32>
    %c22_i32 = arith.constant 22 : i32
    %9 = tpu.dynamic_rotate %6 by %c22_i32 dim 1 : vector<10x24x128xf32>, i32 -> vector<10x24x128xf32>
    %cst = arith.constant 0.000000e+00 : f32
    %10 = vector.broadcast %cst : f32 to vector<8x16x128xf32>
    %11 = vector.extract_strided_slice %6 {offsets = [0, 0, 0], sizes = [8, 16, 128], strides = [1, 1, 1]} : vector<10x24x128xf32> to vector<8x16x128xf32>
    %12 = vector.extract_strided_slice %7 {offsets = [0, 0], sizes = [1, 128], strides = [1, 1]} : vector<9x128xf32> to vector<1x128xf32>
    %13 = vector.shape_cast %12 : vector<1x128xf32> to vector<128xf32>
    %14 = vector.shape_cast %13 : vector<128xf32> to vector<1x1x128xf32>
    %15 = vector.broadcast %14 : vector<1x1x128xf32> to vector<8x16x128xf32>
    %16 = arith.mulf %11, %15 : vector<8x16x128xf32>
    %17 = arith.addf %10, %16 : vector<8x16x128xf32>
    %18 = vector.extract_strided_slice %8 {offsets = [0, 0, 0], sizes = [8, 16, 128], strides = [1, 1, 1]} : vector<10x24x128xf32> to vector<8x16x128xf32>
    %19 = vector.extract_strided_slice %7 {offsets = [1, 0], sizes = [1, 128], strides = [1, 1]} : vector<9x128xf32> to vector<1x128xf32>
    %20 = vector.shape_cast %19 : vector<1x128xf32> to vector<128xf32>
    %21 = vector.shape_cast %20 : vector<128xf32> to vector<1x1x128xf32>
    %22 = vector.broadcast %21 : vector<1x1x128xf32> to vector<8x16x128xf32>
    %23 = arith.mulf %18, %22 : vector<8x16x128xf32>
    %24 = arith.addf %17, %23 : vector<8x16x128xf32>
    %25 = vector.extract_strided_slice %9 {offsets = [0, 0, 0], sizes = [8, 16, 128], strides = [1, 1, 1]} : vector<10x24x128xf32> to vector<8x16x128xf32>
    %26 = vector.extract_strided_slice %7 {offsets = [2, 0], sizes = [1, 128], strides = [1, 1]} : vector<9x128xf32> to vector<1x128xf32>
    %27 = vector.shape_cast %26 : vector<1x128xf32> to vector<128xf32>
    %28 = vector.shape_cast %27 : vector<128xf32> to vector<1x1x128xf32>
    %29 = vector.broadcast %28 : vector<1x1x128xf32> to vector<8x16x128xf32>
    %30 = arith.mulf %25, %29 : vector<8x16x128xf32>
    %31 = arith.addf %24, %30 : vector<8x16x128xf32>
    %32 = vector.extract_strided_slice %6 {offsets = [1, 0, 0], sizes = [8, 16, 128], strides = [1, 1, 1]} : vector<10x24x128xf32> to vector<8x16x128xf32>
    %33 = vector.extract_strided_slice %7 {offsets = [3, 0], sizes = [1, 128], strides = [1, 1]} : vector<9x128xf32> to vector<1x128xf32>
    %34 = vector.shape_cast %33 : vector<1x128xf32> to vector<128xf32>
    %35 = vector.shape_cast %34 : vector<128xf32> to vector<1x1x128xf32>
    %36 = vector.broadcast %35 : vector<1x1x128xf32> to vector<8x16x128xf32>
    %37 = arith.mulf %32, %36 : vector<8x16x128xf32>
    %38 = arith.addf %31, %37 : vector<8x16x128xf32>
    %39 = vector.extract_strided_slice %8 {offsets = [1, 0, 0], sizes = [8, 16, 128], strides = [1, 1, 1]} : vector<10x24x128xf32> to vector<8x16x128xf32>
    %40 = vector.extract_strided_slice %7 {offsets = [4, 0], sizes = [1, 128], strides = [1, 1]} : vector<9x128xf32> to vector<1x128xf32>
    %41 = vector.shape_cast %40 : vector<1x128xf32> to vector<128xf32>
    %42 = vector.shape_cast %41 : vector<128xf32> to vector<1x1x128xf32>
    %43 = vector.broadcast %42 : vector<1x1x128xf32> to vector<8x16x128xf32>
    %44 = arith.mulf %39, %43 : vector<8x16x128xf32>
    %45 = arith.addf %38, %44 : vector<8x16x128xf32>
    %46 = vector.extract_strided_slice %9 {offsets = [1, 0, 0], sizes = [8, 16, 128], strides = [1, 1, 1]} : vector<10x24x128xf32> to vector<8x16x128xf32>
    %47 = vector.extract_strided_slice %7 {offsets = [5, 0], sizes = [1, 128], strides = [1, 1]} : vector<9x128xf32> to vector<1x128xf32>
    %48 = vector.shape_cast %47 : vector<1x128xf32> to vector<128xf32>
    %49 = vector.shape_cast %48 : vector<128xf32> to vector<1x1x128xf32>
    %50 = vector.broadcast %49 : vector<1x1x128xf32> to vector<8x16x128xf32>
    %51 = arith.mulf %46, %50 : vector<8x16x128xf32>
    %52 = arith.addf %45, %51 : vector<8x16x128xf32>
    %53 = vector.extract_strided_slice %6 {offsets = [2, 0, 0], sizes = [8, 16, 128], strides = [1, 1, 1]} : vector<10x24x128xf32> to vector<8x16x128xf32>
    %54 = vector.extract_strided_slice %7 {offsets = [6, 0], sizes = [1, 128], strides = [1, 1]} : vector<9x128xf32> to vector<1x128xf32>
    %55 = vector.shape_cast %54 : vector<1x128xf32> to vector<128xf32>
    %56 = vector.shape_cast %55 : vector<128xf32> to vector<1x1x128xf32>
    %57 = vector.broadcast %56 : vector<1x1x128xf32> to vector<8x16x128xf32>
    %58 = arith.mulf %53, %57 : vector<8x16x128xf32>
    %59 = arith.addf %52, %58 : vector<8x16x128xf32>
    %60 = vector.extract_strided_slice %8 {offsets = [2, 0, 0], sizes = [8, 16, 128], strides = [1, 1, 1]} : vector<10x24x128xf32> to vector<8x16x128xf32>
    %61 = vector.extract_strided_slice %7 {offsets = [7, 0], sizes = [1, 128], strides = [1, 1]} : vector<9x128xf32> to vector<1x128xf32>
    %62 = vector.shape_cast %61 : vector<1x128xf32> to vector<128xf32>
    %63 = vector.shape_cast %62 : vector<128xf32> to vector<1x1x128xf32>
    %64 = vector.broadcast %63 : vector<1x1x128xf32> to vector<8x16x128xf32>
    %65 = arith.mulf %60, %64 : vector<8x16x128xf32>
    %66 = arith.addf %59, %65 : vector<8x16x128xf32>
    %67 = vector.extract_strided_slice %9 {offsets = [2, 0, 0], sizes = [8, 16, 128], strides = [1, 1, 1]} : vector<10x24x128xf32> to vector<8x16x128xf32>
    %68 = vector.extract_strided_slice %7 {offsets = [8, 0], sizes = [1, 128], strides = [1, 1]} : vector<9x128xf32> to vector<1x128xf32>
    %69 = vector.shape_cast %68 : vector<1x128xf32> to vector<128xf32>
    %70 = vector.shape_cast %69 : vector<128xf32> to vector<1x1x128xf32>
    %71 = vector.broadcast %70 : vector<1x1x128xf32> to vector<8x16x128xf32>
    %72 = arith.mulf %67, %71 : vector<8x16x128xf32>
    %73 = arith.addf %66, %72 : vector<8x16x128xf32>
    %74 = vector.shape_cast %73 : vector<8x16x128xf32> to vector<128x128xf32>
    %c0_13 = arith.constant 0 : index
    %c0_14 = arith.constant 0 : index
    %75 = vector.load %arg6[%c0_13, %c0_14] : memref<128x128xf32, #tpu.memory_space<vmem>>, vector<128x128xf32>
    %cst_15 = arith.constant dense<0.000000e+00> : vector<128x128xf32>
    %76 = tpu.matmul %74, %75, %cst_15 {dimension_numbers = #tpu.dot_dimension_numbers<[1], [0], [0], [1], [0, 0, 1, 1], [], []>} : vector<128x128xf32>, vector<128x128xf32>, vector<128x128xf32> -> vector<128x128xf32>
    %cst_16 = arith.constant dense<0.000000e+00> : vector<128xf32>
    %77 = vector.multi_reduction <add>, %76, %cst_16 [0] : vector<128x128xf32> to vector<128xf32>
    %78 = vector.shape_cast %77 : vector<128xf32> to vector<1x128xf32>
    %79 = arith.mulf %76, %76 : vector<128x128xf32>
    %cst_17 = arith.constant dense<0.000000e+00> : vector<128xf32>
    %80 = vector.multi_reduction <add>, %79, %cst_17 [0] : vector<128x128xf32> to vector<128xf32>
    %81 = vector.shape_cast %80 : vector<128xf32> to vector<1x128xf32>
    %82 = tpu.concatenate %78, %81 in 0 : vector<1x128xf32>, vector<1x128xf32> -> vector<2x128xf32>
    %c0_18 = arith.constant 0 : index
    %c0_19 = arith.constant 0 : index
    %c0_20 = arith.constant 0 : index
    %c0_21 = arith.constant 0 : index
    %83 = vector.load %arg8[%c0_18, %c0_19, %c0_20, %c0_21] : memref<1x1x2x128xf32, #tpu.memory_space<vmem>>, vector<1x1x2x128xf32>
    %84 = vector.shape_cast %83 : vector<1x1x2x128xf32> to vector<2x128xf32>
    %85 = vector.shape_cast %82 : vector<2x128xf32> to vector<1x1x2x128xf32>
    tpu.vector_store %arg8[%c0_18, %c0_19, %c0_20, %c0_21], %85 {strides = array<i32>} : memref<1x1x2x128xf32, #tpu.memory_space<vmem>>, vector<1x1x2x128xf32>,
    %c0_22 = arith.constant 0 : index
    %c0_23 = arith.constant 0 : index
    %c0_24 = arith.constant 0 : index
    %c0_25 = arith.constant 0 : index
    %86 = vector.load %arg7[%c0_22, %c0_23, %c0_24, %c0_25] : memref<1x1x128x128xf32, #tpu.memory_space<vmem>>, vector<1x1x128x128xf32>
    %87 = vector.shape_cast %86 : vector<1x1x128x128xf32> to vector<128x128xf32>
    %88 = vector.shape_cast %76 : vector<128x128xf32> to vector<1x1x128x128xf32>
    tpu.vector_store %arg7[%c0_22, %c0_23, %c0_24, %c0_25], %88 {strides = array<i32>} : memref<1x1x128x128xf32, #tpu.memory_space<vmem>>, vector<1x1x128x128xf32>,
    return
  }
  func.func @transform_0(%arg0: i32, %arg1: i32) -> (i32, i32, i32, i32) {
    %c0_i32 = arith.constant 0 : i32
    %c0_i32_0 = arith.constant 0 : i32
    %c0_i32_1 = arith.constant 0 : i32
    return %arg0, %arg1, %c0_i32, %c0_i32_0 : i32, i32, i32, i32
  }
  func.func @transform_1(%arg0: i32, %arg1: i32) -> (i32, i32, i32, i32) {
    %c1_i32 = arith.constant 1 : i32
    %0 = arith.addi %arg1, %c1_i32 : i32
    %c8_i32 = arith.constant 8 : i32
    %1 = arith.muli %0, %c8_i32 : i32
    %c0_i32 = arith.constant 0 : i32
    %c0_i32_0 = arith.constant 0 : i32
    %c0_i32_1 = arith.constant 0 : i32
    return %arg0, %1, %c0_i32, %c0_i32_0 : i32, i32, i32, i32
  }
  func.func @transform_2(%arg0: i32, %arg1: i32) -> (i32, i32, i32, i32) {
    %c1_i32 = arith.constant 1 : i32
    %0 = arith.addi %arg1, %c1_i32 : i32
    %c8_i32 = arith.constant 8 : i32
    %1 = arith.muli %0, %c8_i32 : i32
    %c1_i32_0 = arith.constant 1 : i32
    %2 = arith.addi %1, %c1_i32_0 : i32
    %c0_i32 = arith.constant 0 : i32
    %c0_i32_1 = arith.constant 0 : i32
    %c0_i32_2 = arith.constant 0 : i32
    return %arg0, %2, %c0_i32, %c0_i32_1 : i32, i32, i32, i32
  }
  func.func @transform_3(%arg0: i32, %arg1: i32) -> (i32, i32) {
    %c0_i32 = arith.constant 0 : i32
    %c0_i32_0 = arith.constant 0 : i32
    %c0_i32_1 = arith.constant 0 : i32
    return %c0_i32, %c0_i32_0 : i32, i32
  }
  func.func @transform_4(%arg0: i32, %arg1: i32) -> (i32, i32) {
    %c0_i32 = arith.constant 0 : i32
    %c0_i32_0 = arith.constant 0 : i32
    %c0_i32_1 = arith.constant 0 : i32
    return %c0_i32, %c0_i32_0 : i32, i32
  }
  func.func @transform_5(%arg0: i32, %arg1: i32) -> (i32, i32, i32, i32) {
    %c0_i32 = arith.constant 0 : i32
    %c0_i32_0 = arith.constant 0 : i32
    %c0_i32_1 = arith.constant 0 : i32
    return %arg0, %arg1, %c0_i32, %c0_i32_0 : i32, i32, i32, i32
  }
  func.func @transform_6(%arg0: i32, %arg1: i32) -> (i32, i32, i32, i32) {
    %c0_i32 = arith.constant 0 : i32
    %c0_i32_0 = arith.constant 0 : i32
    %c0_i32_1 = arith.constant 0 : i32
    return %arg0, %arg1, %c0_i32, %c0_i32_0 : i32, i32, i32, i32
  }
}

module attributes {stable_mosaic.version = 11 : i64} {
  func.func @_bn_apply_kernel(%arg0: i32, %arg1: i32, %arg2: memref<1x1x128x128xf32, #tpu.memory_space<vmem>>, %arg3: memref<1x128xf32, #tpu.memory_space<vmem>>, %arg4: memref<1x128xf32, #tpu.memory_space<vmem>>, %arg5: memref<1x1x128x128xf32, #tpu.memory_space<vmem>>) attributes {dimension_semantics = [#tpu.dimension_semantics<parallel>, #tpu.dimension_semantics<parallel>], iteration_bounds = array<i64: 2, 2>, scalar_prefetch = 0 : i64, scratch_operands = 0 : i64, tpu.core_type = #tpu.core_type<tc>, window_params = [{transform_indices = @transform_0, window_bounds = array<i64: 1, 1, 128, 128>}, {pipeline_mode = #tpu.pipeline_mode<synchronous>, transform_indices = @transform_1, window_bounds = array<i64: 1, 128>}, {pipeline_mode = #tpu.pipeline_mode<synchronous>, transform_indices = @transform_2, window_bounds = array<i64: 1, 128>}, {transform_indices = @transform_3, window_bounds = array<i64: 1, 1, 128, 128>}]} {
    %c0 = arith.constant 0 : index
    %c0_0 = arith.constant 0 : index
    %c0_1 = arith.constant 0 : index
    %c0_2 = arith.constant 0 : index
    %0 = vector.load %arg2[%c0, %c0_0, %c0_1, %c0_2] : memref<1x1x128x128xf32, #tpu.memory_space<vmem>>, vector<1x1x128x128xf32>
    %1 = vector.shape_cast %0 : vector<1x1x128x128xf32> to vector<128x128xf32>
    %c0_3 = arith.constant 0 : index
    %c0_4 = arith.constant 0 : index
    %2 = vector.load %arg3[%c0_3, %c0_4] : memref<1x128xf32, #tpu.memory_space<vmem>>, vector<1x128xf32>
    %3 = vector.shape_cast %2 : vector<1x128xf32> to vector<128xf32>
    %4 = vector.shape_cast %3 : vector<128xf32> to vector<1x128xf32>
    %5 = vector.broadcast %4 : vector<1x128xf32> to vector<128x128xf32>
    %6 = arith.mulf %1, %5 : vector<128x128xf32>
    %c0_5 = arith.constant 0 : index
    %c0_6 = arith.constant 0 : index
    %7 = vector.load %arg4[%c0_5, %c0_6] : memref<1x128xf32, #tpu.memory_space<vmem>>, vector<1x128xf32>
    %8 = vector.shape_cast %7 : vector<1x128xf32> to vector<128xf32>
    %9 = vector.shape_cast %8 : vector<128xf32> to vector<1x128xf32>
    %10 = vector.broadcast %9 : vector<1x128xf32> to vector<128x128xf32>
    %11 = arith.addf %6, %10 : vector<128x128xf32>
    %c0_7 = arith.constant 0 : index
    %c0_8 = arith.constant 0 : index
    %c0_9 = arith.constant 0 : index
    %c0_10 = arith.constant 0 : index
    %12 = vector.load %arg5[%c0_7, %c0_8, %c0_9, %c0_10] : memref<1x1x128x128xf32, #tpu.memory_space<vmem>>, vector<1x1x128x128xf32>
    %13 = vector.shape_cast %12 : vector<1x1x128x128xf32> to vector<128x128xf32>
    %14 = vector.shape_cast %11 : vector<128x128xf32> to vector<1x1x128x128xf32>
    tpu.vector_store %arg5[%c0_7, %c0_8, %c0_9, %c0_10], %14 {strides = array<i32>} : memref<1x1x128x128xf32, #tpu.memory_space<vmem>>, vector<1x1x128x128xf32>,
    return
  }
  func.func @transform_0(%arg0: i32, %arg1: i32) -> (i32, i32, i32, i32) {
    %c0_i32 = arith.constant 0 : i32
    %c0_i32_0 = arith.constant 0 : i32
    %c0_i32_1 = arith.constant 0 : i32
    return %arg0, %arg1, %c0_i32, %c0_i32_0 : i32, i32, i32, i32
  }
  func.func @transform_1(%arg0: i32, %arg1: i32) -> (i32, i32) {
    %c0_i32 = arith.constant 0 : i32
    %c0_i32_0 = arith.constant 0 : i32
    %c0_i32_1 = arith.constant 0 : i32
    return %c0_i32, %c0_i32_0 : i32, i32
  }
  func.func @transform_2(%arg0: i32, %arg1: i32) -> (i32, i32) {
    %c0_i32 = arith.constant 0 : i32
    %c0_i32_0 = arith.constant 0 : i32
    %c0_i32_1 = arith.constant 0 : i32
    return %c0_i32, %c0_i32_0 : i32, i32
  }
  func.func @transform_3(%arg0: i32, %arg1: i32) -> (i32, i32, i32, i32) {
    %c0_i32 = arith.constant 0 : i32
    %c0_i32_0 = arith.constant 0 : i32
    %c0_i32_1 = arith.constant 0 : i32
    return %arg0, %arg1, %c0_i32, %c0_i32_0 : i32, i32, i32, i32
  }
}

</mosaic_0001>

<bundles_post_ra>
// kernel: separable_conv2d.3
= control target key start
LH: loop header
LB: loop body
LE: loop exit
PB: predicated region body
PF: predicated region fallthrough
CT: control target
= control target key end

     0   :  { %s489_s12 = smov 0   ;;  %s491_s13 = smov 0   ;;  %s582_s0 = inlined_call_operand.vmem [shape: f32[2,2,128,128], index: 0, kind: input, shape index: {}]   ;;  %s583_s1 = inlined_call_operand.vmem [shape: f32[1,128], index: 1, kind: input, shape index: {}]   ;;  %s584_s2 = inlined_call_operand.vmem [shape: f32[1,128], index: 2, kind: input, shape index: {}]   ;;  %s585_s3 = inlined_call_operand.vmem [shape: f32[2,2,128,128], index: 3, kind: output, shape index: {}]  }
   0x1   :  { %s493_s14 = smov 0   ;;  %s495_s15 = smov 0  }
   0x2   :  { %s497_s16 = smov 0  }
   0x3 LB: > { %s22_s17 = sadd.s32 1, %s459_s14  ;;  %s25_s18 = sadd.s32 1, %s463_s15  ;;  %s467_s16 = sphi %s497_s16, %s13_s16   ;;  %s463_s15 = sphi %s495_s15, %s589_s15   ;;  %s459_s14 = sphi %s493_s14, %s588_s14   ;;  %s455_s13 = sphi %s491_s13, %s587_s13   ;;  %s451_s12 = sphi %s489_s12, %s586_s12  }
   0x4   : > { %p23_p0 = scmp.ge.s32.totalorder %s22_s17, 2  ;;  %p378_p1 = scmp.ge.s32.totalorder %s467_s16, 1 }
   0x5   : > { %p157_p2 = scmp.lt.s32.totalorder %s467_s16, 5 }
   0x6   : > { %s591_s17 = smov (%p23_p0, %s22_s17), 0  ;;  %s593_s18 = smov (!%p23_p0, %s25_s18), %s463_s15 }
   0x7   : > { %p158_p3 = pnand %p378_p1, %p157_p2  ;;  %p27_p4 = scmp.ge.s32.totalorder %s593_s18, 2 }
   0x8   : > { %p189_p5 = scmp.lt.s32.totalorder (!%p158_p3), %s455_s13, 1  ;;  %p191_p6 = scmp.lt.s32.totalorder (!%p158_p3), %s451_s12, 1 }
   0x9   : > { %s595_s18 = smov (%p27_p4, %s593_s18), 0  ;;  %161 = sbr.rel (%p158_p3) target bundleno = 40 (0x28), region = 32 }
   0xe   : > { %s597_s13 = smov (!%p189_p5, %s455_s13), 1  ;;  %s599_s12 = smov (!%p191_p6, %s451_s12), 1  ;;  %v427_v0 = vld [vmem:[%s583_s1] ss:$0 sm:$0xff] }
   0xf   : > { %s380_s19 = sshll.u32 %s597_s13, 5  ;;  %s379_s20 = sshll.u32 %s599_s12, 4  ;;  %v428_v1 = vld [vmem:[%s584_s2] ss:$0 sm:$0xff] }
  0x10   : > { %s195_s21 = sadd.s32 %s380_s19, %s379_s20 }
  0x11   : > { %s381_s24 = sshll.u32 %s195_s21, 3 }
  0x12   : > { %s525_s27 = scalar_lea.vmem %s582_s0, %s381_s24  ;;  %s539_s5 = scalar_lea.vmem %s585_s3, %s381_s24 }
  0x13   : > { %v207_v2 = vld [vmem:[%s525_s27] sm:$0xff]  ;;  %v208_v3 = vld [vmem:[%s525_s27 + $0x8] sm:$0xff]  ;;  %v209_v4 = vld [vmem:[%s525_s27 + $0x10] sm:$0xff] }
  0x14   : > { %v227_v5 = vmul.f32 %v427_v0, %v207_v2  ;;  %v228_v6 = vmul.f32 %v427_v0, %v208_v3  ;;  %v229_v7 = vmul.f32 %v427_v0, %v209_v4  ;;  %v210_v8 = vld [vmem:[%s525_s27 + $0x18] sm:$0xff]  ;;  %v211_v9 = vld [vmem:[%s525_s27 + $0x20] sm:$0xff]  ;;  %v212_v10 = vld [vmem:[%s525_s27 + $0x28] sm:$0xff] }
  0x15   : > { %v230_v11 = vmul.f32 %v427_v0, %v210_v8  ;;  %v231_v12 = vmul.f32 %v427_v0, %v211_v9  ;;  %v232_v13 = vmul.f32 %v427_v0, %v212_v10  ;;  %v213_v14 = vld [vmem:[%s525_s27 + $0x30] sm:$0xff]  ;;  %v214_v15 = vld [vmem:[%s525_s27 + $0x38] sm:$0xff]  ;;  %v215_v16 = vld [vmem:[%s525_s27 + $0x40] sm:$0xff] }
  0x16   : > { %v247_v17 = vadd.f32 %v428_v1, %v227_v5  ;;  %v248_v18 = vadd.f32 %v428_v1, %v228_v6  ;;  %v249_v19 = vadd.f32 %v428_v1, %v229_v7  ;;  %v233_v20 = vmul.f32 %v427_v0, %v213_v14  ;;  %v216_v21 = vld [vmem:[%s525_s27 + $0x48] sm:$0xff]  ;;  %v217_v24 = vld [vmem:[%s525_s27 + $0x50] sm:$0xff]  ;;  %v218_v27 = vld [vmem:[%s525_s27 + $0x58] sm:$0xff] }
  0x17   : > { %v250_v22 = vadd.f32 %v428_v1, %v230_v11  ;;  %v234_v23 = vmul.f32 %v427_v0, %v214_v15  ;;  %v251_v25 = vadd.f32 %v428_v1, %v231_v12  ;;  %v235_v26 = vmul.f32 %v427_v0, %v215_v16  ;;  %v219_v30 = vld [vmem:[%s525_s27 + $0x60] sm:$0xff]  ;;  %v220_v33 = vld [vmem:[%s525_s27 + $0x68] sm:$0xff]  ;;  %v221_v36 = vld [vmem:[%s525_s27 + $0x70] sm:$0xff] }
  0x18   : > { %263 = vst [vmem:[%s539_s5] sm:$0xff] %v247_v17  ;;  %v252_v28 = vadd.f32 %v428_v1, %v232_v13  ;;  %v236_v29 = vmul.f32 %v427_v0, %v216_v21  ;;  %v253_v31 = vadd.f32 %v428_v1, %v233_v20  ;;  %v237_v32 = vmul.f32 %v427_v0, %v217_v24  ;;  %v222_v39 = vld [vmem:[%s525_s27 + $0x78] sm:$0xff] }
  0x19   : > { %264 = vst [vmem:[%s539_s5 + $0x8] sm:$0xff] %v248_v18  ;;  %v254_v34 = vadd.f32 %v428_v1, %v234_v23  ;;  %v238_v35 = vmul.f32 %v427_v0, %v218_v27  ;;  %v255_v37 = vadd.f32 %v428_v1, %v235_v26  ;;  %v239_v38 = vmul.f32 %v427_v0, %v219_v30 }
  0x1a   : > { %265 = vst [vmem:[%s539_s5 + $0x10] sm:$0xff] %v249_v19  ;;  %v256_v40 = vadd.f32 %v428_v1, %v236_v29  ;;  %v240_v41 = vmul.f32 %v427_v0, %v220_v33  ;;  %v257_v42 = vadd.f32 %v428_v1, %v237_v32  ;;  %v241_v43 = vmul.f32 %v427_v0, %v221_v36 }
  0x1b   : > { %266 = vst [vmem:[%s539_s5 + $0x18] sm:$0xff] %v250_v22  ;;  %v258_v44 = vadd.f32 %v428_v1, %v238_v35  ;;  %v242_v45 = vmul.f32 %v427_v0, %v222_v39  ;;  %v259_v46 = vadd.f32 %v428_v1, %v239_v38 }
  0x1c   : > { %267 = vst [vmem:[%s539_s5 + $0x20] sm:$0xff] %v251_v25  ;;  %v260_v47 = vadd.f32 %v428_v1, %v240_v41  ;;  %v261_v48 = vadd.f32 %v428_v1, %v241_v43 }
  0x1d   : > { %268 = vst [vmem:[%s539_s5 + $0x28] sm:$0xff] %v252_v28  ;;  %v262_v49 = vadd.f32 %v428_v1, %v242_v45 }
  0x1e   : > { %269 = vst [vmem:[%s539_s5 + $0x30] sm:$0xff] %v253_v31 }
  0x1f   : > { %270 = vst [vmem:[%s539_s5 + $0x38] sm:$0xff] %v254_v34 }
  0x20   : > { %271 = vst [vmem:[%s539_s5 + $0x40] sm:$0xff] %v255_v37 }
  0x21   : > { %272 = vst [vmem:[%s539_s5 + $0x48] sm:$0xff] %v256_v40 }
  0x22   : > { %273 = vst [vmem:[%s539_s5 + $0x50] sm:$0xff] %v257_v42 }
  0x23   : > { %274 = vst [vmem:[%s539_s5 + $0x58] sm:$0xff] %v258_v44 }
  0x24   : > { %275 = vst [vmem:[%s539_s5 + $0x60] sm:$0xff] %v259_v46 }
  0x25   : > { %276 = vst [vmem:[%s539_s5 + $0x68] sm:$0xff] %v260_v47 }
  0x26   : > { %277 = vst [vmem:[%s539_s5 + $0x70] sm:$0xff] %v261_v48 }
  0x27   : > { %278 = vst [vmem:[%s539_s5 + $0x78] sm:$0xff] %v262_v49 }
  0x28 PF: > { %s13_s16 = sadd.s32 1, %s467_s16   ;;  %s586_s12 = smov %s459_s14 }
  0x29   : > { %p10_p7 = scmp.ge.s32.totalorder %s13_s16, 6   ;;  %s587_s13 = smov %s463_s15 }
  0x2a   : > { %s588_s14 = smov %s591_s17  ;;  %s589_s15 = smov %s595_s18 }
  0x2b   :  { %12 = sbr.rel (!%p10_p7) target bundleno = 3 (0x3), region = 62 }

// kernel: separable_conv2d.2
= control target key start
LH: loop header
LB: loop body
LE: loop exit
PB: predicated region body
PF: predicated region fallthrough
CT: control target
= control target key end

     0   :  { %s1419_s21 = smov 0   ;;  %s1421_s22 = smov 0   ;;  %s2340_s0 = inlined_call_operand.vmem [shape: f32[2,18,24,128], index: 0, kind: input, shape index: {}, may-alias: {0,1,2}]   ;;  %s2341_s1 = inlined_call_operand.vmem [shape: f32[2,18,24,128], index: 1, kind: input, shape index: {}, may-alias: {0,1,2}]   ;;  %s2342_s2 = inlined_call_operand.vmem [shape: f32[2,18,24,128], index: 2, kind: input, shape index: {}, may-alias: {0,1,2}]   ;;  %s2343_s3 = inlined_call_operand.vmem [shape: f32[9,128], index: 3, kind: input, shape index: {}]   ;;  %s2344_s4 = inlined_call_operand.vmem [shape: f32[128,128], index: 4, kind: input, shape index: {}]   ;;  %s2345_s5 = inlined_call_operand.vmem [shape: f32[2,2,128,128], index: 5, kind: output, shape index: {0}]   ;;  %s2346_s6 = inlined_call_operand.vmem [shape: f32[2,2,2,128], index: 6, kind: output, shape index: {1}]  }
   0x1   :  { %s1423_s23 = smov 0   ;;  %s1425_s24 = smov 0  }
   0x2   :  { %s1427_s25 = smov 0  }
   0x3 LB: > { %s26_s26 = sadd.s32 1, %s1374_s23  ;;  %s29_s27 = sadd.s32 1, %s1378_s24  ;;  %s1382_s25 = sphi %s1427_s25, %s17_s25   ;;  %s1378_s24 = sphi %s1425_s24, %s2382_s24   ;;  %s1374_s23 = sphi %s1423_s23, %s2381_s23   ;;  %s1370_s22 = sphi %s1421_s22, %s2380_s22   ;;  %s1366_s21 = sphi %s1419_s21, %s2379_s21  }
   0x4   : > { %p27_p0 = scmp.ge.s32.totalorder %s26_s26, 2  ;;  %p1225_p1 = scmp.ge.s32.totalorder %s1382_s25, 1 }
   0x5   : > { %p301_p2 = scmp.lt.s32.totalorder %s1382_s25, 5 }
   0x6   : > { %s2384_s26 = smov (%p27_p0, %s26_s26), 0  ;;  %s2386_s27 = smov (!%p27_p0, %s29_s27), %s1378_s24 }
   0x7   : > { %p302_p3 = pnand %p1225_p1, %p301_p2  ;;  %p31_p4 = scmp.ge.s32.totalorder %s2386_s27, 2 }
   0x9   : > { %s2388_s27 = smov (%p31_p4, %s2386_s27), 0  ;;  %305 = sbr.rel (%p302_p3) target bundleno = 283 (0x11b), region = 40 }
   0xe   : > { %v890_v0 = vld [vmem:[%s2344_s4 + $0x78] sm:$0xff]  ;;  %v889_v1 = vld [vmem:[%s2344_s4 + $0x70] sm:$0xff]  ;;  %s1458_s8 = sshll.u32 %s1366_s21, 3  ;;  %p382_p5 = scmp.lt.s32.totalorder %s1370_s22, 1  ;;  %v888_v2 = vld [vmem:[%s2344_s4 + $0x68] sm:$0xff]  ;;  %v504_v3 = vlaneseq  ;;  %vm1014_vm2 = vcmask 1040384  }
   0xf   : > { %891 = vmatpush.msra.mxu0 %v890_v0  ;;  %1251 = vmatpush.msra.mxu1 %v890_v0  ;;  %p384_p6 = scmp.lt.s32.totalorder %s1458_s8, 17  ;;  %v887_v4 = vld [vmem:[%s2344_s4 + $0x60] sm:$0xff]  ;;  %v886_v6 = vld [vmem:[%s2344_s4 + $0x58] sm:$0xff]  ;;  %v885_v8 = vld [vmem:[%s2344_s4 + $0x50] sm:$0xff]  ;;  %p427_p9 = scmp.lt.s32.totalorder %s1366_s21, 1 }
  0x10   : > { %1252 = vmatpush.msra.mxu2 %v890_v0  ;;  %1253 = vmatpush.msra.mxu3 %v890_v0  ;;  %s2390_s22 = smov (!%p382_p5, %s1370_s22), 1  ;;  %v1476_v5 = vld [vmem:[%s2343_s3] sm:$0xff]  ;;  %v1481_v7 = vshrl.u32 %v504_v3, 7  ;;  %v884_v10 = vld [vmem:[%s2344_s4 + $0x48] sm:$0xff]  ;;  %v1541_v30 = vld [vmem:[%s2344_s4 + $0x38] sm:$0xff] }
  0x11   : > { %892 = vmatpush.msra.mxu0 %v889_v1  ;;  %1254 = vmatpush.msra.mxu1 %v889_v1  ;;  %s385_s11 = scalar_select %p384_p6, %s1458_s8, 17  ;;  %v1488_v9 = vperm.slane %v1476_v5, 0  ;;  %v1508_v14 = vperm.slane %v1476_v5, 1  ;;  %v1521_v20 = vperm.slane %v1476_v5, 2  ;;  %v1526_v21 = vld [vmem:[%s2344_s4 + $0x40] sm:$0xff]  ;;  %v1546_v33 = vperm.slane %v1476_v5, 3 }
  0x12   : > { %1255 = vmatpush.msra.mxu2 %v889_v1  ;;  %1256 = vmatpush.msra.mxu3 %v889_v1  ;;  %s1471_s14 = smul.u32 54, %s2390_s22  ;;  %vm506_vm0 = vcmp.lt.s32.totalorder %v1481_v7, 7  ;;  %vm557_vm1 = vcmp.lt.s32.totalorder %v1481_v7, 6  ;;  %v1554_v36 = vperm.slane %v1476_v5, 4  ;;  %v1560_v38 = vld [vmem:[%s2344_s4 + $0x30] sm:$0xff]  ;;  %v1579_v45 = vperm.slane %v1476_v5, 5 }
  0x13   : > { %893 = vmatpush.msra.mxu0 %v888_v2  ;;  %1257 = vmatpush.msra.mxu1 %v888_v2  ;;  %s1299_s15 = smul.u32 3, %s385_s11  ;;  %v1584_v46 = vld [vmem:[%s2344_s4 + $0x28] sm:$0xff]  ;;  %v1594_v49 = vperm.slane %v1476_v5, 6  ;;  %v1603_v54 = vld [vmem:[%s2344_s4 + $0x20] sm:$0xff]  ;;  %v1617_v58 = vperm.slane %v1476_v5, 7  ;;  %v1633_v0 = vld [vmem:[%s2344_s4 + $0x18] sm:$0xff] }
  0x14   : > { %1258 = vmatpush.msra.mxu2 %v888_v2  ;;  %1259 = vmatpush.msra.mxu3 %v888_v2  ;;  %v1628_v62 = vld [vmem:[%s2343_s3 + $0x8] ss:$0 sm:$0xff]  ;;  %s2394_s21 = smov (!%p427_p9, %s1366_s21), 1  ;;  %s1235_s9 = sshll.u32 %s2390_s22, 1 }
  0x15   : > { %894 = vmatpush.msra.mxu0 %v887_v4  ;;  %1260 = vmatpush.msra.mxu1 %v887_v4  ;;  %s388_s20 = sadd.s32 %s1471_s14, %s1299_s15  ;;  %s1232_s19 = sshll.u32 %s2394_s21, 4 }
  0x16   : > { %1261 = vmatpush.msra.mxu2 %v887_v4  ;;  %1262 = vmatpush.msra.mxu3 %v887_v4  ;;  %s1227_s30 = sshll.u32 %s388_s20, 3  ;;  %s1822_s20 = sadd.s32 8, %s1458_s8 }
  0x17   : > { %895 = vmatpush.msra.mxu0 %v886_v6  ;;  %1263 = vmatpush.msra.mxu1 %v886_v6  ;;  %s1496_s12 = scalar_lea.vmem %s2340_s0, %s1227_s30  ;;  %p401_p7 = scmp.lt.s32.totalorder %s1822_s20, 17 }
  0x18   : > { %1264 = vmatpush.msra.mxu2 %v886_v6  ;;  %1265 = vmatpush.msra.mxu3 %v886_v6  ;;  %v442_v11 = vld [vmem:[%s1496_s12] sm:$0xff]  ;;  %v1500_v12 = vld [vmem:[%s1496_s12 + $0x8] sm:$0xff]  ;;  %v1503_v13 = vld [vmem:[%s1496_s12 + $0x18] sm:$0xff]  ;;  %s412_s11 = sadd.s32 1, %s1822_s20 }
  0x19   : > { %896 = vmatpush.msra.mxu0 %v885_v8  ;;  %1266 = vmatpush.msra.mxu1 %v885_v8  ;;  %v1511_v15 = vld [vmem:[%s1496_s12 + $0x20] sm:$0xff]  ;;  %v1514_v16 = vld [vmem:[%s1496_s12 + $0x30] sm:$0xff]  ;;  %v1517_v17 = vld [vmem:[%s1496_s12 + $0x38] sm:$0xff]  ;;  %v474_v18 = vrot.slane %v442_v11, 1  ;;  %v484_v19 = vrot.slane %v1500_v12, 1  ;;  %v475_v22 = vrot.slane %v1503_v13, 1  ;;  %v579_v25 = vmul.f32 %v1488_v9, %v442_v11 }
  0x1a   : > { %1267 = vmatpush.msra.mxu2 %v885_v8  ;;  %1268 = vmatpush.msra.mxu3 %v885_v8  ;;  %v485_v23 = vrot.slane %v1511_v15, 1  ;;  %v527_v24 = vrot.slane %v442_v11, 2  ;;  %v476_v26 = vrot.slane %v1514_v16, 1  ;;  %v486_v27 = vrot.slane %v1517_v17, 1  ;;  %v444_v37 = vld [vmem:[%s1496_s12 + $0x10] sm:$0xff]  ;;  %v447_v53 = vld [vmem:[%s1496_s12 + $0x28] sm:$0xff] }
  0x1b   : > { %897 = vmatpush.msra.mxu0 %v884_v10  ;;  %1269 = vmatpush.msra.mxu1 %v884_v10  ;;  %v517_v28 = vsel %vm506_vm0, %v474_v18, %v484_v19  ;;  %v537_v29 = vrot.slane %v1500_v12, 2  ;;  %v528_v31 = vrot.slane %v1503_v13, 2  ;;  %v538_v32 = vrot.slane %v1511_v15, 2  ;;  %v1643_v3 = vld [vmem:[%s1496_s12 + $0x40] sm:$0xff]  ;;  %v1656_v18 = vld [vmem:[%s1496_s12 + $0x48] sm:$0xff]  ;;  %s1890_s8 = scalar_select %p401_p7, %s1822_s20, 17 }
  0x1c   : > { %1270 = vmatpush.msra.mxu2 %v884_v10  ;;  %1271 = vmatpush.msra.mxu3 %v884_v10  ;;  %v612_v35 = vmul.f32 %v1508_v14, %v517_v28  ;;  %v518_v39 = vsel %vm506_vm0, %v475_v22, %v485_v23  ;;  %v529_v40 = vrot.slane %v1514_v16, 2  ;;  %v539_v41 = vrot.slane %v1517_v17, 2  ;;  %p2123_p8 = scmp.lt.s32.totalorder %s412_s11, 17  ;;  %s1233_s20 = sshll.u32 %s2390_s22, 5 }
  0x1d   : > { %898 = vmatpush.msra.mxu0 %v1526_v21  ;;  %1272 = vmatpush.msra.mxu1 %v1526_v21  ;;  %v568_v34 = vsel %vm557_vm1, %v527_v24, %v537_v29  ;;  %v1575_v42 = vsel %vm506_vm0, %v476_v26, %v486_v27  ;;  %v569_v47 = vsel %vm557_vm1, %v528_v31, %v538_v32  ;;  %v494_v50 = vrot.slane %v444_v37, 1  ;;  %v1679_v31 = vld [vmem:[%s1496_s12 + $0x50] sm:$0xff]  ;;  %s1301_s28 = smul.u32 3, %s1890_s8  ;;  %s431_s8 = sadd.s32 %s1233_s20, %s1232_s19 }
  0x1e   : > { %1273 = vmatpush.msra.mxu2 %v1526_v21  ;;  %v628_v43 = vadd.f32 %v612_v35, %v579_v25  ;;  %v645_v44 = vmul.f32 %v1521_v20, %v568_v34  ;;  %v678_v48 = vmul.f32 %v1546_v33, %v1503_v13  ;;  %v711_v52 = vmul.f32 %v1554_v36, %v518_v39  ;;  %v1682_v34 = vld [vmem:[%s1496_s12 + $0x68] sm:$0xff]  ;;  %s2392_s11 = smov (!%p2123_p8, %s412_s11), 17 }
  0x1f   : > { %899 = vmatpush.msra.mxu0 %v1541_v30  ;;  %1275 = vmatpush.msra.mxu1 %v1541_v30  ;;  %v1610_v55 = vsel %vm557_vm1, %v529_v40, %v539_v41  ;;  %v583_v56 = vmul.f32 %v1488_v9, %v1514_v16  ;;  %v616_v57 = vmul.f32 %v1508_v14, %v1575_v42  ;;  %v547_v63 = vrot.slane %v444_v37, 2  ;;  %s1957_s29 = sadd.s32 %s1301_s28, %s1471_s14  ;;  %s1234_s28 = sshll.u32 %s431_s8, 3 }
  0x20   : > { %1276 = vmatpush.msra.mxu2 %v1541_v30  ;;  %v661_v51 = vadd.f32 %v645_v44, %v628_v43  ;;  %v1622_v59 = vmul.f32 %v1508_v14, %v518_v39  ;;  %v744_v61 = vmul.f32 %v1579_v45, %v569_v47  ;;  %v1637_v1 = vmul.f32 %v1521_v20, %v569_v47  ;;  %v1712_v47 = vld [vmem:[%s2344_s4] sm:$0xff]  ;;  %s1229_s30 = sshll.u32 %s1957_s29, 3  ;;  %s2302_s7 = scalar_lea.vmem %s2345_s5, %s1234_s28 }
  0x21   : > { %900 = vmatpush.msra.mxu0 %v1560_v38  ;;  %1278 = vmatpush.msra.mxu1 %v1560_v38  ;;  %v777_v2 = vmul.f32 %v1594_v49, %v1514_v16  ;;  %v495_v4 = vrot.slane %v447_v53, 1  ;;  %v507_v5 = vsel %vm506_vm0, %v484_v19, %v494_v50  ;;  %v548_v8 = vrot.slane %v447_v53, 2  ;;  %v1661_v19 = vld [vmem:[%s2344_s4 + $0x10] sm:$0xff]  ;;  %2358 = vst [vmem:[#allocation2_spill] sm:$0xff] %v1682_v34  ;;  %s1998_s10 = scalar_lea.vmem %s2341_s1, %s1229_s30 }
  0x22   : > { %1279 = vmatpush.msra.mxu2 %v1560_v38  ;;  %v694_v60 = vadd.f32 %v678_v48, %v661_v51  ;;  %1274 = vmatpush.msra.mxu3 %v1526_v21  ;;  %v558_v10 = vsel %vm557_vm1, %v537_v29, %v547_v63  ;;  %v580_v11 = vmul.f32 %v1488_v9, %v1500_v12  ;;  %v1670_v12 = vld [vmem:[%s1496_s12 + $0x60] sm:$0xff]  ;;  %v496_v28 = vrot.slane %v1643_v3, 1 }
  0x23   : > { %901 = vmatpush.msra.mxu0 %v1584_v46  ;;  %1281 = vmatpush.msra.mxu1 %v1584_v46  ;;  %v632_v21 = vadd.f32 %v616_v57, %v583_v56  ;;  %v649_v22 = vmul.f32 %v1521_v20, %v1610_v55  ;;  %v810_v24 = vmul.f32 %v1617_v58, %v1575_v42  ;;  %v549_v37 = vrot.slane %v1643_v3, 2 }
  0x24   : > { %1282 = vmatpush.msra.mxu2 %v1584_v46  ;;  %v727_v6 = vadd.f32 %v711_v52, %v694_v60  ;;  %1277 = vmatpush.msra.mxu3 %v1541_v30  ;;  %v843_v26 = vmul.f32 %v1628_v62, %v1610_v55  ;;  %v613_v29 = vmul.f32 %v1508_v14, %v507_v5  ;;  %v1687_v30 = vld [vmem:[%s2344_s4 + $0x8] sm:$0xff]  ;;  %v477_v40 = vrot.slane %v1656_v18, 1 }
  0x25   : > { %902 = vmatpush.msra.mxu0 %v1603_v54  ;;  %1284 = vmatpush.msra.mxu1 %v1603_v54  ;;  %v1695_v35 = vsel %vm506_vm0, %v485_v23, %v495_v4  ;;  %v646_v39 = vmul.f32 %v1521_v20, %v558_v10  ;;  %v478_v23 = vrot.slane %v1670_v12, 1  ;;  %v679_v48 = vmul.f32 %v1546_v33, %v1511_v15 }
  0x26   : > { %1285 = vmatpush.msra.mxu2 %v1603_v54  ;;  %v760_v25 = vadd.f32 %v744_v61, %v727_v6  ;;  %1280 = vmatpush.msra.mxu3 %v1560_v38  ;;  %v1706_v38 = vsel %vm557_vm1, %v538_v32, %v548_v8  ;;  %v629_v44 = vadd.f32 %v613_v29, %v580_v11  ;;  %v487_v50 = vrot.slane %v1679_v31, 1 }
  0x27   : > { %903 = vmatpush.msra.mxu0 %v1633_v0  ;;  %1287 = vmatpush.msra.mxu1 %v1633_v0  ;;  %v488_v32 = vrot.slane %v1682_v34, 1  ;;  %v530_v51 = vrot.slane %v1656_v18, 2  ;;  %v712_v56 = vmul.f32 %v1554_v36, %v1695_v35  ;;  %v665_v57 = vadd.f32 %v649_v22, %v632_v21 }
  0x28   : > { %1288 = vmatpush.msra.mxu2 %v1633_v0  ;;  %v793_v43 = vadd.f32 %v777_v2, %v760_v25  ;;  %1283 = vmatpush.msra.mxu3 %v1584_v46  ;;  %v662_v53 = vadd.f32 %v646_v39, %v629_v44  ;;  %v540_v46 = vrot.slane %v1679_v31, 2  ;;  %v1728_v60 = vmul.f32 %v1554_v36, %v1575_v42 }
  0x29   : > { %904 = vmatpush.msra.mxu0 %v1661_v19  ;;  %1290 = vmatpush.msra.mxu1 %v1661_v19  ;;  %v1735_v61 = vsel %vm506_vm0, %v486_v27, %v496_v28  ;;  %v531_v63 = vrot.slane %v1670_v12, 2  ;;  %v745_v42 = vmul.f32 %v1579_v45, %v1706_v38  ;;  %v541_v4 = vrot.slane %v1682_v34, 2 }
  0x2a   : > { %1291 = vmatpush.msra.mxu2 %v1661_v19  ;;  %v826_v52 = vadd.f32 %v810_v24, %v793_v43  ;;  %v695_v3 = vadd.f32 %v679_v48, %v662_v53  ;;  %v1747_v27 = vsel %vm557_vm1, %v539_v41, %v549_v37  ;;  %v584_v5 = vmul.f32 %v1488_v9, %v1517_v17  ;;  %v1809_v48 = vld [vmem:[%s1496_s12 + $0x90] sm:$0xff] }
  0x2b   : > { %905 = vmatpush.msra.mxu0 %v1687_v30  ;;  %1293 = vmatpush.msra.mxu1 %v1687_v30  ;;  %v1755_v6 = vsel %vm506_vm0, %v477_v40, %v487_v50  ;;  %v1761_v8 = vsel %vm506_vm0, %v478_v23, %v488_v32  ;;  %v778_v10 = vmul.f32 %v1594_v49, %v1517_v17  ;;  %v1799_v40 = vld [vmem:[%s1496_s12 + $0x80] sm:$0xff] }
  0x2c   : > { %1294 = vmatpush.msra.mxu2 %v1687_v30  ;;  %v859_v2 = vadd.f32 %v843_v26, %v826_v52  ;;  %1286 = vmatpush.msra.mxu3 %v1603_v54  ;;  %v728_v41 = vadd.f32 %v712_v56, %v695_v3  ;;  %v1770_v11 = vsel %vm557_vm1, %v530_v51, %v540_v46  ;;  %v1788_v26 = vld [vmem:[%s1496_s12 + $0x78] sm:$0xff]  ;;  %v2350_v3 = vrot.slane %v1799_v40, 1 }
  0x2d   : > { %906 = vmatpush.msra.mxu0 %v1712_v47  ;;  %1296 = vmatpush.msra.mxu1 %v1712_v47  ;;  %v587_v21 = vmul.f32 %v1488_v9, %v1670_v12  ;;  %v617_v22 = vmul.f32 %v1508_v14, %v1735_v61  ;;  %v1780_v54 = vsel %vm557_vm1, %v531_v63, %v541_v4  ;;  %v1814_v56 = vld [vmem:[%s1496_s12 + $0x98] sm:$0xff] }
  0x2e   : > { %907 = vmatmul.f32.vlgmr.msra.gmra.mxu0 %v859_v2  ;;  %v620_v24 = vmul.f32 %v1508_v14, %v1761_v8  ;;  %v682_v25 = vmul.f32 %v1546_v33, %v1656_v18  ;;  %1297 = vmatpush.msra.mxu2 %v1712_v47  ;;  %v1792_v28 = vmul.f32 %v1579_v45, %v1610_v55 }
  0x2f   : > { %v761_v29 = vadd.f32 %v745_v42, %v728_v41  ;;  %v811_v37 = vmul.f32 %v1617_v58, %v1735_v61  ;;  %v715_v39 = vmul.f32 %v1554_v36, %v1755_v6  ;;  %2359 = vst [vmem:[#allocation3_spill] sm:$0xff] %v1799_v40  ;;  %1289 = vmatpush.msra.mxu3 %v1633_v0  ;;  %v479_v0 = vrot.slane %v1788_v26, 1 }
  0x30   : > { %v650_v43 = vmul.f32 %v1521_v20, %v1747_v27  ;;  %v844_v44 = vmul.f32 %v1628_v62, %v1747_v27  ;;  %v698_v55 = vadd.f32 %v682_v25, %v665_v57  ;;  %v748_v23 = vmul.f32 %v1579_v45, %v1770_v11  ;;  %2360 = vst [vmem:[#allocation4_spill] sm:$0xff] %v1814_v56 }
  0x31   : > { %v794_v51 = vadd.f32 %v778_v10, %v761_v29  ;;  %v636_v52 = vadd.f32 %v620_v24, %v587_v21  ;;  %v653_v53 = vmul.f32 %v1521_v20, %v1780_v54  ;;  %1292 = vmatpush.msra.mxu3 %v1661_v19  ;;  %v633_v63 = vadd.f32 %v617_v22, %v584_v5 }
  0x32   : > { %v731_v2 = vadd.f32 %v715_v39, %v698_v55  ;;  %v781_v57 = vmul.f32 %v1594_v49, %v1670_v12  ;;  %v814_v41 = vmul.f32 %v1617_v58, %v1761_v8  ;;  %v480_v10 = vrot.slane %v1809_v48, 1 }
  0x33   : > { %v827_v42 = vadd.f32 %v811_v37, %v794_v51  ;;  %v532_v21 = vrot.slane %v1788_v26, 2  ;;  %1295 = vmatpush.msra.mxu3 %v1687_v30  ;;  %v2348_v5 = vrot.slane %v1814_v56, 1  ;;  %v1834_v22 = vsel %vm506_vm0, %v479_v0, %v2350_v3 }
  0x34   : > { %v764_v19 = vadd.f32 %v748_v23, %v731_v2  ;;  %v2349_v24 = vrot.slane %v1799_v40, 2  ;;  %v1839_v25 = vmul.f32 %v1508_v14, %v1695_v35  ;;  %v669_v37 = vadd.f32 %v653_v53, %v636_v52 }
  0x35   : > { %v860_v29 = vadd.f32 %v844_v44, %v827_v42  ;;  %v847_v30 = vmul.f32 %v1628_v62, %v1780_v54  ;;  %1298 = vmatpush.msra.mxu3 %v1712_v47  ;;  %v533_v55 = vrot.slane %v1809_v48, 2  ;;  %v2347_v23 = vrot.slane %v1814_v56, 2  ;;  %v456_v42 = vld [vmem:[%s1496_s12 + $0x70] sm:$0xff] }
  0x36   : > { %v797_v39 = vadd.f32 %v781_v57, %v764_v19  ;;  %v1851_v35 = vsel %vm557_vm1, %v532_v21, %v2349_v24  ;;  %v1855_v44 = vmul.f32 %v1521_v20, %v1706_v38  ;;  %v1859_v47 = vmul.f32 %v1554_v36, %v1735_v61 }
  0x37   : > { %910 = vmatmul.f32.gmra.mxu0 %v860_v29  ;;  %v686_v51 = vmul.f32 %v1546_v33, %v1788_v26  ;;  %v719_v52 = vmul.f32 %v1554_v36, %v1834_v22  ;;  %v666_v53 = vadd.f32 %v650_v43, %v633_v63  ;;  %v1867_v0 = vmul.f32 %v1579_v45, %v1747_v27  ;;  %v453_v63 = vld [vmem:[%s1496_s12 + $0x58] sm:$0xff] }
  0x38   : > { %v830_v2 = vadd.f32 %v814_v41, %v797_v39  ;;  %v1873_v38 = vsel %vm506_vm0, %v480_v10, %v2348_v5  ;;  %v1877_v61 = vmul.f32 %v1508_v14, %v1755_v6  ;;  %v1881_v57 = vmul.f32 %v1521_v20, %v1770_v11 }
  0x39   : > { %v702_v43 = vadd.f32 %v686_v51, %v669_v37  ;;  %v752_v27 = vmul.f32 %v1579_v45, %v1851_v35  ;;  %v1896_v10 = vsel %vm557_vm1, %v533_v55, %v2347_v23  ;;  %v591_v21 = vmul.f32 %v1488_v9, %v1809_v48 }
  0x3a   : > { %v863_v41 = vadd.f32 %v847_v30, %v830_v2  ;;  %v581_v19 = vmul.f32 %v1488_v9, %v1503_v13  ;;  %v624_v29 = vmul.f32 %v1508_v14, %v1873_v38  ;;  %v785_v30 = vmul.f32 %v1594_v49, %v1809_v48 }
  0x3b   : > { %v735_v37 = vadd.f32 %v719_v52, %v702_v43  ;;  %v818_v39 = vmul.f32 %v1617_v58, %v1873_v38  ;;  %v680_v51 = vmul.f32 %v1546_v33, %v1514_v16  ;;  %v497_v2 = vrot.slane %v453_v63, 1 }
  0x3c   : > { %919 = vmatmul.f32.vlgmr.msra.gmra.mxu1 %v863_v41  ;;  %v630_v55 = vadd.f32 %v1622_v59, %v581_v19  ;;  %v498_v23 = vrot.slane %v456_v42, 1  ;;  %v550_v13 = vrot.slane %v453_v63, 2  ;;  %v551_v24 = vrot.slane %v456_v42, 2 }
  0x3d   : > { %v768_v5 = vadd.f32 %v752_v27, %v735_v37  ;;  %v588_v52 = vmul.f32 %v1488_v9, %v1682_v34  ;;  %v1919_v59 = vsel %vm506_vm0, %v487_v50, %v497_v2  ;;  %v683_v27 = vmul.f32 %v1546_v33, %v1679_v31 }
  0x3e   : > { %v663_v43 = vadd.f32 %v1637_v1, %v630_v55  ;;  %v1925_v16 = vsel %vm506_vm0, %v488_v32, %v498_v23  ;;  %v851_v1 = vmul.f32 %v1628_v62, %v1896_v10  ;;  %v1935_v50 = vsel %vm557_vm1, %v540_v46, %v550_v13 }
  0x3f   : > { %v801_v63 = vadd.f32 %v785_v30, %v768_v5  ;;  %v1941_v32 = vsel %vm557_vm1, %v541_v4, %v551_v24  ;;  %v1945_v23 = vmul.f32 %v1554_v36, %v1761_v8  ;;  %v657_v5 = vmul.f32 %v1521_v20, %v1896_v10  ;;  %v459_v24 = vld [vmem:[%s1496_s12 + $0x88] sm:$0xff] }
  0x40   : > { %v696_v42 = vadd.f32 %v680_v51, %v663_v43  ;;  %v621_v41 = vmul.f32 %v1508_v14, %v1925_v16  ;;  %v654_v19 = vmul.f32 %v1521_v20, %v1941_v32  ;;  %v699_v37 = vadd.f32 %v683_v27, %v666_v53  ;;  %v462_v51 = vld [vmem:[%s1496_s12 + $0xa0] sm:$0xff] }
  0x41   : > { %v834_v46 = vadd.f32 %v818_v39, %v801_v63  ;;  %v716_v4 = vmul.f32 %v1554_v36, %v1919_v59  ;;  %v779_v30 = vmul.f32 %v1594_v49, %v1656_v18  ;;  %v749_v39 = vmul.f32 %v1579_v45, %v1935_v50 }
  0x42   : > { %v729_v8 = vadd.f32 %v1728_v60, %v696_v42  ;;  %v637_v55 = vadd.f32 %v621_v41, %v588_v52  ;;  %v640_v2 = vadd.f32 %v624_v29, %v591_v21  ;;  %v782_v43 = vmul.f32 %v1594_v49, %v1682_v34 }
  0x43   : > { %v867_v13 = vadd.f32 %v851_v1, %v834_v46  ;;  %v732_v53 = vadd.f32 %v716_v4, %v699_v37  ;;  %v812_v63 = vmul.f32 %v1617_v58, %v1755_v6  ;;  %v815_v60 = vmul.f32 %v1617_v58, %v1925_v16 }
  0x44   : > { %v762_v27 = vadd.f32 %v1792_v28, %v729_v8  ;;  %v499_v42 = vrot.slane %v459_v24, 1  ;;  %v670_v52 = vadd.f32 %v654_v19, %v637_v55  ;;  %v500_v3 = vrot.slane %v462_v51, 1 }
  0x45   : > { %931 = vmatmul.f32.vlgmr.msra.gmra.mxu2 %v867_v13  ;;  %v765_v41 = vadd.f32 %v749_v39, %v732_v53  ;;  %v552_v21 = vrot.slane %v459_v24, 2  ;;  %v845_v1 = vmul.f32 %v1628_v62, %v1770_v11  ;;  %v2361_v46 = vrot.slane %v1799_v40, 1 }
  0x46   : > { %v795_v29 = vadd.f32 %v779_v30, %v762_v27  ;;  %v687_v28 = vmul.f32 %v1546_v33, %v1799_v40  ;;  %v1985_v19 = vmul.f32 %v1579_v45, %v1780_v54  ;;  %v848_v4 = vmul.f32 %v1628_v62, %v1941_v32 }
  0x47   : > { %v1979_v6 = vsel %vm506_vm0, %v2361_v46, %v499_v42  ;;  %v798_v37 = vadd.f32 %v782_v43, %v765_v41  ;;  %v2362_v11 = vrot.slane %v1799_v40, 2  ;;  %v2002_v54 = vmul.f32 %v1508_v14, %v1834_v22  ;;  %v2017_v42 = vld [vmem:[%s1496_s12 + $0xa8] sm:$0xff] }
  0x48   : > { %v2006_v8 = vmul.f32 %v1521_v20, %v1851_v35  ;;  %v828_v30 = vadd.f32 %v812_v63, %v795_v29  ;;  %v553_v55 = vrot.slane %v462_v51, 2  ;;  %v2363_v13 = vrot.slane %v1814_v56, 1  ;;  %v2029_v29 = vld [vmem:[%s1998_s10] sm:$0xff] }
  0x49   : > { %v1993_v24 = vsel %vm557_vm1, %v2362_v11, %v552_v21  ;;  %v831_v39 = vadd.f32 %v815_v60, %v798_v37  ;;  %v703_v43 = vadd.f32 %v687_v28, %v670_v52  ;;  %v720_v27 = vmul.f32 %v1554_v36, %v1979_v6  ;;  %v2026_v60 = vld [vmem:[%s1496_s12 + $0xb0] sm:$0xff] }
  0x4a   : > { %v2012_v53 = vsel %vm506_vm0, %v2363_v13, %v500_v3  ;;  %v673_v41 = vadd.f32 %v657_v5, %v640_v2  ;;  %v2021_v21 = vmul.f32 %v1554_v36, %v1873_v38  ;;  %v861_v63 = vadd.f32 %v845_v1, %v828_v30  ;;  %v2032_v3 = vld [vmem:[%s1998_s10 + $0x8] sm:$0xff] }
  0x4b   : > { %2364 = vst [vmem:[#allocation5_spill] sm:$0xff] %v2012_v53  ;;  %v753_v51 = vmul.f32 %v1579_v45, %v1993_v24  ;;  %v864_v52 = vadd.f32 %v848_v4, %v831_v39  ;;  %v592_v46 = vmul.f32 %v1488_v9, %v1814_v56  ;;  %v736_v28 = vadd.f32 %v720_v27, %v703_v43 }
  0x4c   : > { %v786_v5 = vmul.f32 %v1594_v49, %v1814_v56  ;;  %913 = vmatmul.f32.gmra.mxu0 %v861_v63  ;;  %v2365_v38 = vrot.slane %v1814_v56, 2  ;;  %v625_v1 = vmul.f32 %v1508_v14, %v2012_v53  ;;  %v819_v37 = vmul.f32 %v1617_v58, %v2012_v53 }
  0x4d   : > { %v481_v4 = vrot.slane %v2017_v42, 1  ;;  %922 = vmatmul.f32.gmra.mxu1 %v864_v52  ;;  %v769_v11 = vadd.f32 %v753_v51, %v736_v28  ;;  %v482_v30 = vrot.slane %v2029_v29, 1  ;;  %v2351_v39 = vrot.slane %v2026_v60, 1 }
  0x4e   : > { %v2042_v2 = vsel %vm557_vm1, %v2365_v38, %v553_v55  ;;  %v534_v43 = vrot.slane %v2017_v42, 2  ;;  %v535_v55 = vrot.slane %v2029_v29, 2  ;;  %v2356_v27 = vrot.slane %v2026_v60, 2 }
  0x4f   : > { %v802_v38 = vadd.f32 %v786_v5, %v769_v11  ;;  %v852_v52 = vmul.f32 %v1628_v62, %v2042_v2  ;;  %v2062_v51 = vsel %vm506_vm0, %v481_v4, %v2351_v39  ;;  %v690_v28 = vmul.f32 %v1546_v33, %v2017_v42 }
  0x50   : > { %v2068_v13 = vmul.f32 %v1579_v45, %v1896_v10  ;;  %v2072_v63 = vmul.f32 %v1508_v14, %v1919_v59  ;;  %v2078_v5 = vsel %vm557_vm1, %v534_v43, %v2356_v27  ;;  %v723_v4 = vmul.f32 %v1554_v36, %v2062_v51 }
  0x51   : > { %v2084_v11 = vmul.f32 %v1521_v20, %v1935_v50  ;;  %v835_v39 = vadd.f32 %v819_v37, %v802_v38  ;;  %v2367_v10 = vrot.slane %v2032_v3, 1  ;;  %v706_v53 = vadd.f32 %v690_v28, %v673_v41 }
  0x52   : > { %v641_v40 = vadd.f32 %v625_v1, %v592_v46  ;;  %v658_v43 = vmul.f32 %v1521_v20, %v2042_v2  ;;  %v2368_v27 = vrot.slane %v2032_v3, 2  ;;  %v756_v37 = vmul.f32 %v1579_v45, %v2078_v5 }
  0x53   : > { %2366 = vst [vmem:[#allocation6_spill] sm:$0xff] %v2084_v11  ;;  %v2090_v56 = vsel %vm506_vm0, %v482_v30, %v2367_v10  ;;  %v868_v38 = vadd.f32 %v852_v52, %v835_v39  ;;  %v739_v11 = vadd.f32 %v723_v4, %v706_v53  ;;  %v789_v30 = vmul.f32 %v1594_v49, %v2029_v29 }
  0x54   : > { %v2099_v34 = vsel %vm557_vm1, %v535_v55, %v2368_v27  ;;  %v582_v41 = vmul.f32 %v1488_v9, %v1511_v15  ;;  %v2109_v46 = vmul.f32 %v1554_v36, %v1925_v16  ;;  %v2113_v1 = vmul.f32 %v1579_v45, %v1941_v32 }
  0x55   : > { %v2117_v55 = vmul.f32 %v1508_v14, %v1979_v6  ;;  %v822_v53 = vmul.f32 %v1617_v58, %v2090_v56  ;;  %934 = vmatmul.f32.gmra.mxu2 %v868_v38  ;;  %v772_v15 = vadd.f32 %v756_v37, %v739_v11  ;;  %v681_v32 = vmul.f32 %v1546_v33, %v1517_v17 }
  0x56   : > { %v631_v16 = vadd.f32 %v1839_v25, %v582_v41  ;;  %v585_v39 = vmul.f32 %v1488_v9, %v1656_v18  ;;  %v2134_v27 = vmul.f32 %v1521_v20, %v1993_v24  ;;  %v674_v52 = vadd.f32 %v658_v43, %v641_v40  ;;  %v465_v25 = vld [vmem:[%s1496_s12 + $0xb8] sm:$0xff]  ;;  %s1302_s12 = smul.u32 3, %s2392_s11 }
  0x57   : > { %v855_v28 = vmul.f32 %v1628_v62, %v2099_v34  ;;  %v589_v4 = vmul.f32 %v1488_v9, %v1788_v26  ;;  %v805_v11 = vadd.f32 %v789_v30, %v772_v15  ;;  %v684_v18 = vmul.f32 %v1546_v33, %v1670_v12  ;;  %v468_v15 = vld [vmem:[%s1998_s10 + $0x10] sm:$0xff]  ;;  %s439_s10 = sadd.s32 %s1235_s9, %s2394_s21 }
  0x58   : > { %v664_v10 = vadd.f32 %v1855_v44, %v631_v16  ;;  %v634_v17 = vadd.f32 %v1877_v61, %v585_v39  ;;  %v780_v37 = vmul.f32 %v1594_v49, %v1679_v31  ;;  %v813_v40 = vmul.f32 %v1617_v58, %v1919_v59  ;;  %s419_s15 = sadd.s32 %s1302_s12, %s1471_s14  ;;  %s1236_s11 = sshll.u32 %s439_s10, 1 }
  0x59   : > { %v638_v43 = vadd.f32 %v2002_v54, %v589_v4  ;;  %v688_v38 = vmul.f32 %v1546_v33, %v1809_v48  ;;  %v838_v44 = vadd.f32 %v822_v53, %v805_v11  ;;  %v501_v30 = vrot.slane %v465_v25, 1  ;;  %s1231_s14 = sshll.u32 %s419_s15, 3  ;;  %s441_s15 = scalar_lea.vmem %s2346_s6, %s1236_s11 }
  0x5a   : > { %v697_v61 = vadd.f32 %v681_v32, %v664_v10  ;;  %v667_v12 = vadd.f32 %v1881_v57, %v634_v17  ;;  %v846_v41 = vmul.f32 %v1628_v62, %v1935_v50  ;;  %v783_v59 = vmul.f32 %v1594_v49, %v1788_v26  ;;  %s421_s18 = scalar_lea.vmem %s2342_s2, %s1231_s14 }
  0x5b   : > { %v671_v54 = vadd.f32 %v2006_v8, %v638_v43  ;;  %v554_v48 = vrot.slane %v465_v25, 2  ;;  %v871_v16 = vadd.f32 %v855_v28, %v838_v44  ;;  %v2370_v53 = vrot.slane %v2026_v60, 1 }
  0x5c   : > { %v730_v39 = vadd.f32 %v1859_v47, %v697_v61  ;;  %v700_v4 = vadd.f32 %v684_v18, %v667_v12  ;;  %v816_v50 = vmul.f32 %v1617_v58, %v1834_v22  ;;  %v787_v26 = vmul.f32 %v1594_v49, %v2017_v42 }
  0x5d   : > { %v2170_v57 = vsel %vm506_vm0, %v2370_v53, %v501_v30  ;;  %v704_v32 = vadd.f32 %v688_v38, %v671_v54  ;;  %v2371_v8 = vrot.slane %v2026_v60, 2  ;;  %943 = vmatmul.f32.vlgmr.msra.gmra.mxu3 %v871_v16  ;;  %v502_v11 = vrot.slane %v468_v15, 1  ;;  %v2374_v53 = vld [vmem:[#allocation2_spill] sm:$0xff] }
  0x5e   : > { %v763_v47 = vadd.f32 %v1867_v0, %v730_v39  ;;  %v733_v25 = vadd.f32 %v1945_v23, %v700_v4  ;;  %v555_v17 = vrot.slane %v468_v15, 2  ;;  %v691_v18 = vmul.f32 %v1546_v33, %v2026_v60 }
  0x5f   : > { %v2180_v28 = vsel %vm557_vm1, %v2371_v8, %v554_v48  ;;  %v737_v10 = vadd.f32 %v2021_v21, %v704_v32  ;;  %v724_v43 = vmul.f32 %v1554_v36, %v2170_v57  ;;  %v849_v23 = vmul.f32 %v1628_v62, %v1851_v35 }
  0x60   : > { %v2187_v22 = vmul.f32 %v1521_v20, %v2180_v28  ;;  %v796_v38 = vadd.f32 %v780_v37, %v763_v47  ;;  %v766_v0 = vadd.f32 %v1985_v19, %v733_v25  ;;  %v757_v44 = vmul.f32 %v1579_v45, %v2180_v28  ;;  %v2375_v47 = vld [vmem:[#allocation3_spill] sm:$0xff] }
  0x61   : > { %v770_v61 = vadd.f32 %v2068_v13, %v737_v10  ;;  %v820_v21 = vmul.f32 %v1617_v58, %v2062_v51  ;;  %v853_v12 = vmul.f32 %v1628_v62, %v2078_v5  ;;  %v707_v30 = vadd.f32 %v691_v18, %v674_v52 }
  0x62   : > { %v829_v54 = vadd.f32 %v813_v40, %v796_v38  ;;  %v799_v37 = vadd.f32 %v783_v59, %v766_v0  ;;  %v2372_v19 = vrot.slane %v2032_v3, 1  ;;  %v586_v15 = vmul.f32 %v1488_v9, %v1679_v31  ;;  %v2378_v0 = vld [vmem:[#allocation4_spill] sm:$0xff] }
  0x63   : > { %v803_v13 = vadd.f32 %v787_v26, %v770_v61  ;;  %v2373_v48 = vrot.slane %v2032_v3, 2  ;;  %v740_v52 = vadd.f32 %v724_v43, %v707_v30  ;;  %v790_v40 = vmul.f32 %v1594_v49, %v2032_v3 }
  0x64   : > { %v2209_v35 = vsel %vm506_vm0, %v2372_v19, %v502_v11  ;;  %v862_v59 = vadd.f32 %v846_v41, %v829_v54  ;;  %v832_v39 = vadd.f32 %v816_v50, %v799_v37  ;;  %v635_v4 = vadd.f32 %v2072_v63, %v586_v15  ;;  %v2376_v11 = vld [vmem:[#allocation5_spill] sm:$0xff]  ;;  %v2377_v50 = vld [vmem:[#allocation6_spill] sm:$0xff]  ;;  %v470_v19 = vld [vmem:[%s421_s18 + $0x8] sm:$0xff] }
  0x65   : > { %v2217_v16 = vsel %vm557_vm1, %v2373_v48, %v555_v17  ;;  %v685_v32 = vmul.f32 %v1546_v33, %v2374_v53  ;;  %v836_v31 = vadd.f32 %v820_v21, %v803_v13  ;;  %v773_v26 = vadd.f32 %v757_v44, %v740_v52 }
  0x66   : > { %v823_v8 = vmul.f32 %v1617_v58, %v2209_v35  ;;  %v590_v25 = vmul.f32 %v1488_v9, %v2375_v47  ;;  %v722_v10 = vmul.f32 %v1554_v36, %v2376_v11  ;;  %916 = vmatmul.f32.gmra.mxu0 %v862_v59  ;;  %v865_v41 = vadd.f32 %v849_v23, %v832_v39  ;;  %v471_v39 = vld [vmem:[%s421_s18 + $0x10] sm:$0xff] }
  0x67   : > { %v856_v63 = vmul.f32 %v1628_v62, %v2217_v16  ;;  %v668_v17 = vadd.f32 %v2377_v50, %v635_v4  ;;  %v869_v18 = vadd.f32 %v853_v12, %v836_v31  ;;  %v806_v43 = vadd.f32 %v790_v40, %v773_v26 }
  0x68   : > { %v639_v38 = vadd.f32 %v2117_v55, %v590_v25  ;;  %v689_v44 = vmul.f32 %v1546_v33, %v2378_v0  ;;  %v755_v61 = vmul.f32 %v1579_v45, %v2042_v2  ;;  %v626_v23 = vmul.f32 %v1508_v14, %v2062_v51  ;;  %925 = vmatmul.f32.gmra.mxu1 %v865_v41 }
  0x69   : > { %v659_v21 = vmul.f32 %v1521_v20, %v2078_v5  ;;  %v701_v12 = vadd.f32 %v685_v32, %v668_v17  ;;  %v725_v55 = vmul.f32 %v1554_v36, %v2090_v56  ;;  %v758_v30 = vmul.f32 %v1579_v45, %v2099_v34  ;;  %937 = vmatmul.f32.gmra.mxu2 %v869_v18  ;;  %v469_v5 = vld [vmem:[%s421_s18] sm:$0xff] }
  0x6a   : > { %v839_v54 = vadd.f32 %v823_v8, %v806_v43  ;;  %v672_v37 = vadd.f32 %v2134_v27, %v639_v38  ;;  %v627_v2 = vmul.f32 %v1508_v14, %v2170_v57  ;;  %v784_v20 = vmul.f32 %v1594_v49, %v2375_v47 }
  0x6b   : > { %v734_v51 = vadd.f32 %v2109_v46, %v701_v12  ;;  %v593_v56 = vmul.f32 %v1488_v9, %v2017_v42  ;;  %v817_v34 = vmul.f32 %v1617_v58, %v1979_v6  ;;  %v850_v27 = vmul.f32 %v1628_v62, %v1993_v24 }
  0x6c   : > { %v872_v15 = vadd.f32 %v856_v63, %v839_v54  ;;  %v705_v13 = vadd.f32 %v689_v44, %v672_v37  ;;  %v788_v46 = vmul.f32 %v1594_v49, %v2026_v60  ;;  %v692_v52 = vmul.f32 %v1546_v33, %v2029_v29 }
  0x6d   : > { %v767_v14 = vadd.f32 %v2113_v1, %v734_v51  ;;  %v642_v48 = vadd.f32 %v626_v23, %v593_v56  ;;  %v483_v42 = vrot.slane %v469_v5, 1  ;;  %v493_v59 = vrot.slane %v470_v19, 1 }
  0x6e   : > { %946 = vmatmul.f32.gmra.mxu3 %v872_v15  ;;  %v738_v40 = vadd.f32 %v722_v10, %v705_v13  ;;  %v594_v6 = vmul.f32 %v1488_v9, %v2026_v60  ;;  %v821_v24 = vmul.f32 %v1617_v58, %v2170_v57  ;;  %v536_v1 = vrot.slane %v469_v5, 2 }
  0x6f   : > { %v800_v4 = vadd.f32 %v784_v20, %v767_v14  ;;  %v675_v53 = vadd.f32 %v659_v21, %v642_v48  ;;  %v546_v31 = vrot.slane %v470_v19, 2  ;;  %v693_v29 = vmul.f32 %v1546_v33, %v2032_v3 }
  0x70   : > { %v771_v32 = vadd.f32 %v755_v61, %v738_v40  ;;  %v643_v26 = vadd.f32 %v627_v2, %v594_v6  ;;  %v726_v8 = vmul.f32 %v1554_v36, %v2209_v35  ;;  %v503_v11 = vrot.slane %v471_v39, 1 }
  0x71   : > { %v833_v47 = vadd.f32 %v817_v34, %v800_v4  ;;  %v708_v25 = vadd.f32 %v692_v52, %v675_v53  ;;  %v854_v9 = vmul.f32 %v1628_v62, %v2180_v28  ;;  %v526_v60 = vsel %vm506_vm0, %v483_v42, %v493_v59 }
  0x72   : > { %v804_v10 = vadd.f32 %v788_v46, %v771_v32  ;;  %v676_v57 = vadd.f32 %v2187_v22, %v643_v26  ;;  %v791_v50 = vmul.f32 %v1594_v49, %v469_v5  ;;  %v556_v33 = vrot.slane %v471_v39, 2 }
  0x73   : > { %v866_v41 = vadd.f32 %v850_v27, %v833_v47  ;;  %v741_v63 = vadd.f32 %v725_v55, %v708_v25  ;;  %v759_v36 = vmul.f32 %v1579_v45, %v2217_v16  ;;  %v577_v35 = vsel %vm557_vm1, %v536_v1, %v546_v31 }
  0x74   : > { %v837_v3 = vadd.f32 %v821_v24, %v804_v10  ;;  %v709_v17 = vadd.f32 %v693_v29, %v676_v57  ;;  %v824_v18 = vmul.f32 %v1617_v58, %v526_v60  ;;  %v516_v22 = vsel %vm506_vm0, %v493_v59, %v503_v11 }
  0x75   : > { %928 = vmatmul.f32.gmra.mxu1 %v866_v41  ;;  %v774_v28 = vadd.f32 %v758_v30, %v741_v63  ;;  %v792_v0 = vmul.f32 %v1594_v49, %v470_v19  ;;  %v857_v45 = vmul.f32 %v1628_v62, %v577_v35  ;;  %v567_v16 = vsel %vm557_vm1, %v546_v31, %v556_v33 }
  0x76   : > { %v870_v43 = vadd.f32 %v854_v9, %v837_v3  ;;  %v742_v38 = vadd.f32 %v726_v8, %v709_v17  ;;  %v825_v23 = vmul.f32 %v1617_v58, %v516_v22  ;;  %v858_v55 = vmul.f32 %v1628_v62, %v567_v16 }
  0x77   : > { %v807_v44 = vadd.f32 %v791_v50, %v774_v28 }
  0x78   : > { %940 = vmatmul.f32.gmra.mxu2 %v870_v43  ;;  %v775_v61 = vadd.f32 %v759_v36, %v742_v38 }
  0x79   : > { %v840_v21 = vadd.f32 %v824_v18, %v807_v44 }
  0x7a   : > { %v808_v12 = vadd.f32 %v792_v0, %v775_v61 }
  0x7b   : > { %v873_v30 = vadd.f32 %v857_v45, %v840_v21 }
  0x7c   : > { %v841_v54 = vadd.f32 %v825_v23, %v808_v12 }
  0x7d   : > { %949 = vmatmul.f32.gmra.mxu3 %v873_v30 }
  0x7e   : > { %v874_v49 = vadd.f32 %v858_v55, %v841_v54 }
  0x85   : > { %952 = vmatmul.f32.gmra.mxu3 %v874_v49 }
  0xab   : > { %v908_v7 = vpop.f32.mrf.mxu0 }
  0xac   : > { %1017 = vst [vmem:[%s2302_s7] sm:$0xff] %v908_v7  ;;  %v977_v19 = vmul.f32 %v908_v7, %v908_v7 }
  0xb4   : > { %v911_v58 = vpop.f32.mrf.mxu0 }
  0xb5   : > { %1018 = vst [vmem:[%s2302_s7 + $0x8] sm:$0xff] %v911_v58  ;;  %v978_v5 = vmul.f32 %v911_v58, %v911_v58  ;;  %v956_v56 = vadd.f32 %v911_v58, %v908_v7 }
  0xb7   : > { %v993_v27 = vadd.f32 %v978_v5, %v977_v19 }
  0xb9   : > { %v920_v62 = vpop.f32.mrf.mxu1 }
  0xba   : > { %1021 = vst [vmem:[%s2302_s7 + $0x20] sm:$0xff] %v920_v62  ;;  %v981_v42 = vmul.f32 %v920_v62, %v920_v62 }
  0xc8   : > { %v932_v37 = vpop.f32.mrf.mxu2 }
  0xc9   : > { %v914_v2 = vpop.f32.mrf.mxu0  ;;  %1025 = vst [vmem:[%s2302_s7 + $0x40] sm:$0xff] %v932_v37  ;;  %v985_v11 = vmul.f32 %v932_v37, %v932_v37 }
  0xca   : > { %1019 = vst [vmem:[%s2302_s7 + $0x10] sm:$0xff] %v914_v2  ;;  %v923_v51 = vpop.f32.mrf.mxu1  ;;  %v979_v15 = vmul.f32 %v914_v2, %v914_v2  ;;  %v957_v13 = vadd.f32 %v956_v56, %v914_v2 }
  0xcb   : > { %1022 = vst [vmem:[%s2302_s7 + $0x28] sm:$0xff] %v923_v51  ;;  %v982_v4 = vmul.f32 %v923_v51, %v923_v51 }
  0xcc   : > { %v994_v46 = vadd.f32 %v993_v27, %v979_v15 }
  0xd8   : > { %v935_v20 = vpop.f32.mrf.mxu2 }
  0xd9   : > { %1026 = vst [vmem:[%s2302_s7 + $0x48] sm:$0xff] %v935_v20  ;;  %v986_v60 = vmul.f32 %v935_v20, %v935_v20 }
  0xe0   : > { %v944_v34 = vpop.f32.mrf.mxu3 }
  0xe1   : > { %1029 = vst [vmem:[%s2302_s7 + $0x60] sm:$0xff] %v944_v34  ;;  %v989_v28 = vmul.f32 %v944_v34, %v944_v34 }
  0xe3   : > { %v917_v14 = vpop.f32.mrf.mxu0 }
  0xe4   : > { %v958_v48 = vadd.f32 %v957_v13, %v917_v14  ;;  %v980_v52 = vmul.f32 %v917_v14, %v917_v14  ;;  %1020 = vst [vmem:[%s2302_s7 + $0x18] sm:$0xff] %v917_v14 }
  0xe5   : > { %v926_v40 = vpop.f32.mrf.mxu1 }
  0xe6   : > { %v959_v59 = vadd.f32 %v958_v48, %v920_v62  ;;  %v995_v39 = vadd.f32 %v994_v46, %v980_v52  ;;  %1023 = vst [vmem:[%s2302_s7 + $0x30] sm:$0xff] %v926_v40  ;;  %v983_v31 = vmul.f32 %v926_v40, %v926_v40 }
  0xe8   : > { %v996_v6 = vadd.f32 %v995_v39, %v981_v42  ;;  %v960_v24 = vadd.f32 %v959_v59, %v923_v51 }
  0xea   : > { %v997_v1 = vadd.f32 %v996_v6, %v982_v4  ;;  %v961_v32 = vadd.f32 %v960_v24, %v926_v40 }
  0xec   : > { %v938_v53 = vpop.f32.mrf.mxu2  ;;  %v998_v26 = vadd.f32 %v997_v1, %v983_v31 }
  0xed   : > { %1027 = vst [vmem:[%s2302_s7 + $0x50] sm:$0xff] %v938_v53  ;;  %v987_v50 = vmul.f32 %v938_v53, %v938_v53 }
  0xf1   : > { %v947_v29 = vpop.f32.mrf.mxu3 }
  0xf2   : > { %v929_v8 = vpop.f32.mrf.mxu1  ;;  %1030 = vst [vmem:[%s2302_s7 + $0x68] sm:$0xff] %v947_v29  ;;  %v990_v0 = vmul.f32 %v947_v29, %v947_v29 }
  0xf3   : > { %v962_v47 = vadd.f32 %v961_v32, %v929_v8  ;;  %v984_v25 = vmul.f32 %v929_v8, %v929_v8  ;;  %1024 = vst [vmem:[%s2302_s7 + $0x38] sm:$0xff] %v929_v8 }
  0xf5   : > { %v963_v10 = vadd.f32 %v962_v47, %v932_v37  ;;  %v999_v9 = vadd.f32 %v998_v26, %v984_v25 }
  0xf7   : > { %v1000_v57 = vadd.f32 %v999_v9, %v985_v11  ;;  %v964_v41 = vadd.f32 %v963_v10, %v935_v20 }
  0xf9   : > { %v965_v63 = vadd.f32 %v964_v41, %v938_v53  ;;  %v1001_v33 = vadd.f32 %v1000_v57, %v986_v60 }
  0xfb   : > { %v1002_v36 = vadd.f32 %v1001_v33, %v987_v50  ;;  %v941_v3 = vpop.f32.mrf.mxu2 }
  0xfc   : > { %v966_v35 = vadd.f32 %v965_v63, %v941_v3  ;;  %v988_v17 = vmul.f32 %v941_v3, %v941_v3  ;;  %1028 = vst [vmem:[%s2302_s7 + $0x58] sm:$0xff] %v941_v3 }
  0xfe   : > { %v967_v18 = vadd.f32 %v966_v35, %v944_v34  ;;  %v1003_v22 = vadd.f32 %v1002_v36, %v988_v17 }
 0x100   : > { %v1004_v43 = vadd.f32 %v1003_v22, %v989_v28  ;;  %v950_v38 = vpop.f32.mrf.mxu3  ;;  %v968_v44 = vadd.f32 %v967_v18, %v947_v29 }
 0x101   : > { %1031 = vst [vmem:[%s2302_s7 + $0x70] sm:$0xff] %v950_v38  ;;  %v991_v61 = vmul.f32 %v950_v38, %v950_v38 }
 0x102   : > { %v1005_v45 = vadd.f32 %v1004_v43, %v990_v0  ;;  %v969_v16 = vadd.f32 %v968_v44, %v950_v38 }
 0x104   : > { %v1006_v23 = vadd.f32 %v1005_v45, %v991_v61 }
 0x108   : > { %v953_v21 = vpop.f32.mrf.mxu3 }
 0x109   : > { %v970_v12 = vadd.f32 %v969_v16, %v953_v21  ;;  %v992_v55 = vmul.f32 %v953_v21, %v953_v21  ;;  %1032 = vst [vmem:[%s2302_s7 + $0x78] sm:$0xff] %v953_v21 }
 0x10b   : > { %v971_v30 = vrot.slane %v970_v12, 4  ;;  %v1007_v54 = vadd.f32 %v1006_v23, %v992_v55 }
 0x10d   : > { %v972_v49 = vadd.f32 %v971_v30, %v970_v12  ;;  %v1008_v7 = vrot.slane %v1007_v54, 4 }
 0x10f   : > { %v973_v58 = vrot.slane %v972_v49, 2  ;;  %v1009_v62 = vadd.f32 %v1008_v7, %v1007_v54 }
 0x111   : > { %v974_v37 = vadd.f32 %v973_v58, %v972_v49  ;;  %v1010_v2 = vrot.slane %v1009_v62, 2 }
 0x113   : > { %v975_v51 = vrot.slane %v974_v37, 1  ;;  %v1011_v20 = vadd.f32 %v1010_v2, %v1009_v62 }
 0x115   : > { %v1012_v5 = vrot.slane %v1011_v20, 1  ;;  %v976_v19 = vadd.f32 %v975_v51, %v974_v37 }
 0x117   : > { %v1013_v56 = vadd.f32 %v1012_v5, %v1011_v20 }
 0x119   : > { %v1015_v15 = vsel %vm1014_vm2, %v976_v19, %v1013_v56 }
 0x11a   : > { %1016 = vst [vmem:[%s441_s15] sm:$0x3] %v1015_v15 }
 0x11b PF: > { %s17_s25 = sadd.s32 1, %s1382_s25   ;;  %s2379_s21 = smov %s1374_s23 }
 0x11c   : > { %p14_p10 = scmp.ge.s32.totalorder %s17_s25, 6   ;;  %s2380_s22 = smov %s1378_s24 }
 0x11d   : > { %s2381_s23 = smov %s2384_s26  ;;  %s2382_s24 = smov %s2388_s27 }
 0x11e   :  { %16 = sbr.rel (!%p14_p10) target bundleno = 3 (0x3), region = 88 }

</bundles_post_ra>
